<compile_context>
chip_gen: v7x
topology: tpu7x:2x2x1
jax: 0.10.0
libtpu: 0.0.40
codegen_flags: <defaults>
</compile_context>

<pallas_src>
import jax
import jax.numpy as jnp
from jax.experimental import pallas as pl
from jax.experimental.pallas import tpu as pltpu


_VALID_THRESH = 0.001
# Masked-pixel stand-in: (c - SENTINEL)^2 ~ 1e12, finite in f32 and far above
# any realistic squared depth distance, so it never wins a min.
_SENTINEL = -1.0e6
_BIG = 3.0e38                      # running-min init (finite, near f32 max)
_D_BUDGET_BYTES = 8 * 1024 * 1024  # cap on the (P, TILE_R, LANES) workspace


def _chamfer_kernel(cent_ref, tgt_ref, out_ref, minx_ref, sumy_ref, cnt_ref):
    k = pl.program_id(1)
    nk = pl.num_programs(1)

    @pl.when(k == 0)
    def _():
        minx_ref[...] = jnp.full(minx_ref.shape, _BIG, jnp.float32)
        sumy_ref[...] = jnp.zeros_like(sumy_ref)
        cnt_ref[...] = jnp.zeros_like(cnt_ref)

    c = cent_ref[0]                                    # (P, 1, 1) bin centers
    t = tgt_ref[...]                                   # (1, TILE_R, L) pixel tile

    mask = t >= jnp.float32(_VALID_THRESH)             # (1, TILE_R, L)
    t_m = jnp.where(mask, t, jnp.float32(_SENTINEL))   # pre-masked pixels
    maskf = mask[0].astype(jnp.float32)                # (TILE_R, L)

    d = (c - t_m) ** 2                                 # (P, TILE_R, L)

    # cham_x partial: per-center running min, kept lane-dense (P, L).
    minx_ref[...] = jnp.minimum(minx_ref[...], jnp.min(d, axis=1))        # (P, L)

    # cham_y partial: per-pixel min over centers = elementwise min over the
    # leading P axis (pure VALU), summed over valid pixels into lane-dense
    # (1, L) accumulators.
    min_y = jnp.min(d, axis=0)                                            # (TILE_R, L)
    sumy_ref[...] += jnp.sum(min_y * maskf, axis=0, keepdims=True)        # (1, L)
    cnt_ref[...] += jnp.sum(maskf, axis=0, keepdims=True)                 # (1, L)

    @pl.when(k == nk - 1)
    def _():
        p = minx_ref.shape[0]
        per_center = jnp.min(minx_ref[...], axis=1, keepdims=True)            # (P, 1)
        term_x = jnp.sum(per_center, axis=0, keepdims=True) / jnp.float32(p)  # (1, 1)
        sum_y = jnp.sum(sumy_ref[...], axis=1, keepdims=True)                 # (1, 1)
        cnt = jnp.sum(cnt_ref[...], axis=1, keepdims=True)                    # (1, 1)
        term_y = jnp.where(cnt > 0.0, sum_y / jnp.maximum(cnt, 1.0), 0.0)     # (1, 1)
        # TODO(synk): a batch element with zero VALID pixels would crash
        # pytorch3d; here term_y contributes 0 and term_x ~ (c + 1e6)^2.
        out_ref[0] = term_x + term_y


def _round_up(x, m):
    return ((x + m - 1) // m) * m


def _choose_tile_rows(m, p, lanes, max_rows):
    """Rows per streamed tile: fill the distance-workspace budget, multiple of 8."""
    rows_needed = -(-m // lanes)
    budget_pixels = max(_D_BUDGET_BYTES // (4 * max(p, 1)), 8 * lanes)
    rows = max(8, min(budget_pixels // lanes, max_rows))
    rows = max(8, (rows // 8) * 8)
    rows = min(rows, _round_up(max(rows_needed, 1), 8))
    return max(rows, 8)


def bins_chamfer_loss(bins, target_depth_maps, *, lanes=512, max_rows_per_tile=256,
                      vmem_limit_bytes=48 * 1024 * 1024):
    """bins: (N, P+1) f32; target_depth_maps: (N, C, H, W) f32 -> scalar f32."""
    bins = bins.astype(jnp.float32)
    target_depth_maps = target_depth_maps.astype(jnp.float32)

    # Glue: bin-center averaging + flatten (exactly as the PyTorch forward).
    bin_centers = 0.5 * (bins[:, 1:] + bins[:, :-1])              # (N, P)
    n, p = bin_centers.shape
    cents = bin_centers.reshape(n, p, 1, 1)                       # (N, P, 1, 1)

    targets = target_depth_maps.reshape(n, -1)                    # (N, M)
    m = targets.shape[1]

    tile_rows = _choose_tile_rows(m, p, lanes, max_rows_per_tile)
    rows_needed = -(-m // lanes)
    r_total = _round_up(max(rows_needed, 1), tile_rows)
    m_pad = r_total * lanes
    if m_pad != m:
        # Pad with 0.0 (< 0.001), so padded pixels are masked out in-kernel.
        targets = jnp.pad(targets, ((0, 0), (0, m_pad - m)))
    targets = targets.reshape(n, r_total, lanes)                  # dense (rows, lanes) slab
    num_tiles = r_total // tile_rows

    cost = pl.CostEstimate(
        flops=int(4 * n * p * m_pad),
        transcendentals=0,
        bytes_accessed=int(4 * n * m_pad + 4 * n * p + 4 * n),
    )

    out = pl.pallas_call(
        _chamfer_kernel,
        out_shape=jax.ShapeDtypeStruct((n, 1, 1), jnp.float32),
        grid_spec=pltpu.PrefetchScalarGridSpec(
            num_scalar_prefetch=0,
            grid=(n, num_tiles),                                  # reduction axis last
            in_specs=[
                pl.BlockSpec((1, p, 1, 1), lambda b, k: (b, 0, 0, 0)),        # centers (resident)
                pl.BlockSpec((1, tile_rows, lanes), lambda b, k: (b, k, 0)),  # pixel tile stream
            ],
            out_specs=pl.BlockSpec((1, 1, 1), lambda b, k: (b, 0, 0)),
            scratch_shapes=[
                pltpu.VMEM((p, lanes), jnp.float32),   # lane-dense running per-center min
                pltpu.VMEM((1, lanes), jnp.float32),   # lane-dense sum of per-pixel mins
                pltpu.VMEM((1, lanes), jnp.float32),   # lane-dense valid-pixel count
            ],
        ),
        compiler_params=pltpu.CompilerParams(
            dimension_semantics=("parallel", "arbitrary"),
            vmem_limit_bytes=vmem_limit_bytes,
        ),
        cost_estimate=cost,
    )(cents, targets)
    # TODO(synk): for v7x small-N megacore utilization, the pixel axis could be
    # split into a second "parallel" grid axis with per-half partial outputs.
    return jnp.mean(out[:, 0, 0])


def _reference_loss(bins, target_depth_maps):
    """Pure-JAX reference (same math) for a sanity check."""
    bin_centers = 0.5 * (bins[:, 1:] + bins[:, :-1])              # (N, P)
    n, p = bin_centers.shape
    t = target_depth_maps.reshape(n, -1)                          # (N, M)
    mask = t >= 0.001                                             # (N, M)
    d = (bin_centers[:, :, None] - t[:, None, :]) ** 2            # (N, P, M)
    d_masked = jnp.where(mask[:, None, :], d, 1e30)
    cham_x = jnp.min(d_masked, axis=2).sum(axis=1) / p            # (N,)
    min_y = jnp.min(d, axis=1)                                    # (N, M)
    cnt = jnp.sum(mask, axis=1).astype(jnp.float32)
    cham_y = jnp.sum(jnp.where(mask, min_y, 0.0), axis=1) / jnp.maximum(cnt, 1.0)
    return jnp.mean(cham_x + cham_y)


if __name__ == "__main__":
    key = jax.random.PRNGKey(0)
    k1, k2, k3, k4, k5, k6 = jax.random.split(key, 6)

    N, P1, C, H, W = 2, 17, 1, 16, 16                             # P = 16 bin centers
    bins = jax.random.uniform(k1, (N, P1), jnp.float32, minval=0.1, maxval=10.0)
    depth = jax.random.uniform(k2, (N, C, H, W), jnp.float32, minval=0.0, maxval=10.0)
    # Zero out ~30% of pixels so the >= 0.001 mask is actually exercised.
    keep = jax.random.uniform(k3, (N, C, H, W)) > 0.3
    depth = depth * keep.astype(jnp.float32)

    ref = _reference_loss(bins, depth)
    loss = bins_chamfer_loss(bins, depth)
    jax.block_until_ready(loss)
    assert jnp.allclose(loss, ref, rtol=1e-5, atol=1e-5), (loss, ref)

    # Larger input + small forced tile -> multiple streamed pixel tiles per
    # batch, exercising cross-tile accumulation and the padded last tile.
    H2 = W2 = 48
    bins2 = jax.random.uniform(k4, (N, P1), jnp.float32, minval=0.1, maxval=10.0)
    depth2 = jax.random.uniform(k5, (N, C, H2, W2), jnp.float32, minval=0.0, maxval=10.0)
    keep2 = jax.random.uniform(k6, (N, C, H2, W2)) > 0.3
    depth2 = depth2 * keep2.astype(jnp.float32)

    ref2 = _reference_loss(bins2, depth2)
    loss2 = bins_chamfer_loss(bins2, depth2, lanes=128, max_rows_per_tile=8)
    jax.block_until_ready(loss2)
    assert jnp.allclose(loss2, ref2, rtol=1e-5, atol=1e-5), (loss2, ref2)

    print("KERNEL_OK")
</pallas_src>

<mosaic_0001>
module attributes {stable_mosaic.version = 11 : i64} {
  func.func @_chamfer_kernel(%arg0: i32, %arg1: i32, %arg2: memref<1x16x1x1xf32, #tpu.memory_space<vmem>>, %arg3: memref<1x8x512xf32, #tpu.memory_space<vmem>>, %arg4: memref<1x1x1xf32, #tpu.memory_space<vmem>>, %arg5: memref<16x512xf32, #tpu.memory_space<vmem>>, %arg6: memref<1x512xf32, #tpu.memory_space<vmem>>, %arg7: memref<1x512xf32, #tpu.memory_space<vmem>>) attributes {dimension_semantics = [#tpu.dimension_semantics<parallel>, #tpu.dimension_semantics<arbitrary>], iteration_bounds = array<i64: 2, 1>, scalar_prefetch = 0 : i64, scratch_operands = 3 : i64, tpu.core_type = #tpu.core_type<tc>, window_params = [{transform_indices = @transform_0, window_bounds = array<i64: 1, 16, 1, 1>}, {transform_indices = @transform_1, window_bounds = array<i64: 1, 8, 512>}, {transform_indices = @transform_2, window_bounds = array<i64: 1, 1, 1>}]} {
    %c0_i32 = arith.constant 0 : i32
    %0 = arith.cmpi eq, %arg1, %c0_i32 : i32
    %1 = arith.extui %0 : i1 to i32
    %c0_i32_0 = arith.constant 0 : i32
    %2 = arith.cmpi ne, %1, %c0_i32_0 : i32
    scf.if %2 {
      %cst_26 = arith.constant 3.000000e+38 : f32
      %36 = vector.broadcast %cst_26 : f32 to vector<16x512xf32>
      %c0_27 = arith.constant 0 : index
      %c0_28 = arith.constant 0 : index
      %37 = vector.load %arg5[%c0_27, %c0_28] : memref<16x512xf32, #tpu.memory_space<vmem>>, vector<16x512xf32>
      tpu.vector_store %arg5[%c0_27, %c0_28], %36 {strides = array<i32>} : memref<16x512xf32, #tpu.memory_space<vmem>>, vector<16x512xf32>,
      %cst_29 = arith.constant 0.000000e+00 : f32
      %38 = vector.broadcast %cst_29 : f32 to vector<1x512xf32>
      %c0_30 = arith.constant 0 : index
      %c0_31 = arith.constant 0 : index
      %39 = vector.load %arg6[%c0_30, %c0_31] : memref<1x512xf32, #tpu.memory_space<vmem>>, vector<1x512xf32>
      tpu.vector_store %arg6[%c0_30, %c0_31], %38 {strides = array<i32>} : memref<1x512xf32, #tpu.memory_space<vmem>>, vector<1x512xf32>,
      %cst_32 = arith.constant 0.000000e+00 : f32
      %40 = vector.broadcast %cst_32 : f32 to vector<1x512xf32>
      %c0_33 = arith.constant 0 : index
      %c0_34 = arith.constant 0 : index
      %41 = vector.load %arg7[%c0_33, %c0_34] : memref<1x512xf32, #tpu.memory_space<vmem>>, vector<1x512xf32>
      tpu.vector_store %arg7[%c0_33, %c0_34], %40 {strides = array<i32>} : memref<1x512xf32, #tpu.memory_space<vmem>>, vector<1x512xf32>,
    } else {
    }
    %c0 = arith.constant 0 : index
    %c0_1 = arith.constant 0 : index
    %c0_2 = arith.constant 0 : index
    %c0_3 = arith.constant 0 : index
    %3 = vector.load %arg2[%c0, %c0_1, %c0_2, %c0_3] : memref<1x16x1x1xf32, #tpu.memory_space<vmem>>, vector<1x16x1x1xf32>
    %4 = vector.shape_cast %3 : vector<1x16x1x1xf32> to vector<16x1x1xf32>
    %c0_4 = arith.constant 0 : index
    %c0_5 = arith.constant 0 : index
    %c0_6 = arith.constant 0 : index
    %5 = vector.load %arg3[%c0_4, %c0_5, %c0_6] : memref<1x8x512xf32, #tpu.memory_space<vmem>>, vector<1x8x512xf32>
    %cst = arith.constant 1.000000e-03 : f32
    %6 = vector.broadcast %cst : f32 to vector<1x8x512xf32>
    %7 = arith.cmpf oge, %5, %6 : vector<1x8x512xf32>
    %cst_7 = arith.constant -1.000000e+06 : f32
    %8 = vector.broadcast %cst_7 : f32 to vector<1x8x512xf32>
    %9 = arith.select %7, %5, %8 : vector<1x8x512xi1>, vector<1x8x512xf32>
    %10 = vector.shape_cast %7 : vector<1x8x512xi1> to vector<8x512xi1>
    %11 = arith.extui %10 : vector<8x512xi1> to vector<8x512xi32>
    %12 = arith.sitofp %11 : vector<8x512xi32> to vector<8x512xf32>
    %13 = vector.broadcast %4 : vector<16x1x1xf32> to vector<16x8x512xf32>
    %14 = vector.broadcast %9 : vector<1x8x512xf32> to vector<16x8x512xf32>
    %15 = arith.subf %13, %14 : vector<16x8x512xf32>
    %16 = arith.mulf %15, %15 : vector<16x8x512xf32>
    %c0_8 = arith.constant 0 : index
    %c0_9 = arith.constant 0 : index
    %17 = vector.load %arg5[%c0_8, %c0_9] : memref<16x512xf32, #tpu.memory_space<vmem>>, vector<16x512xf32>
    %cst_10 = arith.constant dense<0x7F800000> : vector<16x512xf32>
    %18 = vector.multi_reduction <minimumf>, %16, %cst_10 [1] : vector<16x8x512xf32> to vector<16x512xf32>
    %19 = arith.minimumf %17, %18 : vector<16x512xf32>
    %c0_11 = arith.constant 0 : index
    %c0_12 = arith.constant 0 : index
    %20 = vector.load %arg5[%c0_11, %c0_12] : memref<16x512xf32, #tpu.memory_space<vmem>>, vector<16x512xf32>
    tpu.vector_store %arg5[%c0_11, %c0_12], %19 {strides = array<i32>} : memref<16x512xf32, #tpu.memory_space<vmem>>, vector<16x512xf32>,
    %cst_13 = arith.constant dense<0x7F800000> : vector<8x512xf32>
    %21 = vector.multi_reduction <minimumf>, %16, %cst_13 [0] : vector<16x8x512xf32> to vector<8x512xf32>
    %c0_14 = arith.constant 0 : index
    %c0_15 = arith.constant 0 : index
    %22 = vector.load %arg6[%c0_14, %c0_15] : memref<1x512xf32, #tpu.memory_space<vmem>>, vector<1x512xf32>
    %23 = arith.mulf %21, %12 : vector<8x512xf32>
    %cst_16 = arith.constant dense<0.000000e+00> : vector<512xf32>
    %24 = vector.multi_reduction <add>, %23, %cst_16 [0] : vector<8x512xf32> to vector<512xf32>
    %25 = vector.shape_cast %24 : vector<512xf32> to vector<1x512xf32>
    %26 = arith.addf %22, %25 : vector<1x512xf32>
    %c0_17 = arith.constant 0 : index
    %c0_18 = arith.constant 0 : index
    %27 = vector.load %arg6[%c0_17, %c0_18] : memref<1x512xf32, #tpu.memory_space<vmem>>, vector<1x512xf32>
    tpu.vector_store %arg6[%c0_17, %c0_18], %26 {strides = array<i32>} : memref<1x512xf32, #tpu.memory_space<vmem>>, vector<1x512xf32>,
    %c0_19 = arith.constant 0 : index
    %c0_20 = arith.constant 0 : index
    %28 = vector.load %arg7[%c0_19, %c0_20] : memref<1x512xf32, #tpu.memory_space<vmem>>, vector<1x512xf32>
    %cst_21 = arith.constant dense<0.000000e+00> : vector<512xf32>
    %29 = vector.multi_reduction <add>, %12, %cst_21 [0] : vector<8x512xf32> to vector<512xf32>
    %30 = vector.shape_cast %29 : vector<512xf32> to vector<1x512xf32>
    %31 = arith.addf %28, %30 : vector<1x512xf32>
    %c0_22 = arith.constant 0 : index
    %c0_23 = arith.constant 0 : index
    %32 = vector.load %arg7[%c0_22, %c0_23] : memref<1x512xf32, #tpu.memory_space<vmem>>, vector<1x512xf32>
    tpu.vector_store %arg7[%c0_22, %c0_23], %31 {strides = array<i32>} : memref<1x512xf32, #tpu.memory_space<vmem>>, vector<1x512xf32>,
    %c0_i32_24 = arith.constant 0 : i32
    %33 = arith.cmpi eq, %arg1, %c0_i32_24 : i32
    %34 = arith.extui %33 : i1 to i32
    %c0_i32_25 = arith.constant 0 : i32
    %35 = arith.cmpi ne, %34, %c0_i32_25 : i32
    scf.if %35 {
      %c0_26 = arith.constant 0 : index
      %c0_27 = arith.constant 0 : index
      %36 = vector.load %arg5[%c0_26, %c0_27] : memref<16x512xf32, #tpu.memory_space<vmem>>, vector<16x512xf32>
      %cst_28 = arith.constant dense<0x7F800000> : vector<16xf32>
      %37 = vector.multi_reduction <minimumf>, %36, %cst_28 [1] : vector<16x512xf32> to vector<16xf32>
      %38 = vector.shape_cast %37 : vector<16xf32> to vector<16x1xf32>
      %cst_29 = arith.constant dense<0.000000e+00> : vector<1xf32>
      %39 = vector.multi_reduction <add>, %38, %cst_29 [0] : vector<16x1xf32> to vector<1xf32>
      %40 = vector.shape_cast %39 : vector<1xf32> to vector<1x1xf32>
      %cst_30 = arith.constant 1.600000e+01 : f32
      %41 = vector.broadcast %cst_30 : f32 to vector<1x1xf32>
      %42 = arith.divf %40, %41 : vector<1x1xf32>
      %c0_31 = arith.constant 0 : index
      %c0_32 = arith.constant 0 : index
      %43 = vector.load %arg6[%c0_31, %c0_32] : memref<1x512xf32, #tpu.memory_space<vmem>>, vector<1x512xf32>
      %cst_33 = arith.constant dense<0.000000e+00> : vector<1xf32>
      %44 = vector.multi_reduction <add>, %43, %cst_33 [1] : vector<1x512xf32> to vector<1xf32>
      %45 = vector.shape_cast %44 : vector<1xf32> to vector<1x1xf32>
      %c0_34 = arith.constant 0 : index
      %c0_35 = arith.constant 0 : index
      %46 = vector.load %arg7[%c0_34, %c0_35] : memref<1x512xf32, #tpu.memory_space<vmem>>, vector<1x512xf32>
      %cst_36 = arith.constant dense<0.000000e+00> : vector<1xf32>
      %47 = vector.multi_reduction <add>, %46, %cst_36 [1] : vector<1x512xf32> to vector<1xf32>
      %48 = vector.shape_cast %47 : vector<1xf32> to vector<1x1xf32>
      %cst_37 = arith.constant 0.000000e+00 : f32
      %49 = vector.broadcast %cst_37 : f32 to vector<1x1xf32>
      %50 = arith.cmpf ogt, %48, %49 : vector<1x1xf32>
      %cst_38 = arith.constant 1.000000e+00 : f32
      %51 = vector.broadcast %cst_38 : f32 to vector<1x1xf32>
      %52 = arith.maximumf %48, %51 : vector<1x1xf32>
      %53 = arith.divf %45, %52 : vector<1x1xf32>
      %cst_39 = arith.constant 0.000000e+00 : f32
      %54 = vector.broadcast %cst_39 : f32 to vector<1x1xf32>
      %55 = arith.select %50, %53, %54 : vector<1x1xi1>, vector<1x1xf32>
      %56 = arith.addf %42, %55 : vector<1x1xf32>
      %c0_40 = arith.constant 0 : index
      %c0_41 = arith.constant 0 : index
      %c0_42 = arith.constant 0 : index
      %57 = vector.load %arg4[%c0_40, %c0_41, %c0_42] : memref<1x1x1xf32, #tpu.memory_space<vmem>>, vector<1x1x1xf32>
      %58 = vector.shape_cast %57 : vector<1x1x1xf32> to vector<1x1xf32>
      %59 = vector.shape_cast %56 : vector<1x1xf32> to vector<1x1x1xf32>
      tpu.vector_store %arg4[%c0_40, %c0_41, %c0_42], %59 {strides = array<i32>} : memref<1x1x1xf32, #tpu.memory_space<vmem>>, vector<1x1x1xf32>,
    } else {
    }
    return
  }
  func.func @transform_0(%arg0: i32, %arg1: i32) -> (i32, i32, i32, i32) {
    %c0_i32 = arith.constant 0 : i32
    %c0_i32_0 = arith.constant 0 : i32
    %c0_i32_1 = arith.constant 0 : i32
    %c0_i32_2 = arith.constant 0 : i32
    return %arg0, %c0_i32, %c0_i32_0, %c0_i32_1 : i32, i32, i32, i32
  }
  func.func @transform_1(%arg0: i32, %arg1: i32) -> (i32, i32, i32) {
    %c0_i32 = arith.constant 0 : i32
    %c0_i32_0 = arith.constant 0 : i32
    return %arg0, %arg1, %c0_i32 : i32, i32, i32
  }
  func.func @transform_2(%arg0: i32, %arg1: i32) -> (i32, i32, i32) {
    %c0_i32 = arith.constant 0 : i32
    %c0_i32_0 = arith.constant 0 : i32
    %c0_i32_1 = arith.constant 0 : i32
    return %arg0, %c0_i32, %c0_i32_0 : i32, i32, i32
  }
}

</mosaic_0001>

<bundles_post_ra>
// kernel: tpu_custom_call.1
= control target key start
LH: loop header
LB: loop body
LE: loop exit
PB: predicated region body
PF: predicated region fallthrough
CT: control target
= control target key end

     0   :  { %7 = vsyncpa [#allocation6], 0  ;;  %s2507_s0 = inlined_call_operand.vmem [shape: f32[2,16,1,1], index: 0, kind: input, shape index: {}]   ;;  %s2508_s1 = inlined_call_operand.hbm [shape: f32[2,8,512], index: 1, kind: input, shape index: {}]   ;;  %s2509_s2 = inlined_call_operand.vmem [shape: f32[2,1,1], index: 2, kind: output, shape index: {}]  }
   0x1   :  { %9 = vsyncpa [#allocation6 + $0x1], 0  ;;  %s1619_s9 = smov 0   ;;  %s1621_s10 = smov 0  }
   0x2   :  { %s1623_s11 = smov 0   ;;  %s1625_s12 = smov 0  }
   0x3   :  { %s1627_s13 = smov 0   ;;  %s1629_s14 = smov 0  }
   0x4 LB: > { %s1423_s15 = sadd.s32 4294967295, %s1598_s14   ;;  %s27_s16 = sadd.s32 1, %s1594_s13  ;;  %s1598_s14 = sphi %s1629_s14, %s15_s14   ;;  %s1594_s13 = sphi %s1627_s13, %s2613_s13   ;;  %s1590_s12 = sphi %s1625_s12, %s2612_s12   ;;  %s1586_s11 = sphi %s1623_s11, %s2611_s11   ;;  %s1582_s10 = sphi %s1621_s10, %s2610_s10   ;;  %s1578_s9 = sphi %s1619_s9, %s2609_s9  }
   0x5   : > { %p29_p0 = scmp.ge.s32.totalorder %s27_s16, 2  ;;  %s62_s17 = sadd.s32 1, %s1586_s11 }
   0x6   : > { %p69_p1 = scmp.ne.s32.totalorder %s1586_s11, %s1582_s10  ;;  %p70_p2 = scmp.eq.s32.totalorder %s1598_s14, 0 }
   0x7   : > { %s2615_s16 = smov (%p29_p0, %s27_s16), 0  ;;  %p75_p4 = scmp.ne.s32.totalorder %s1582_s10, %s1578_s9 }
   0x8   : > { %p1655_p3 = por %p70_p2, %p69_p1  ;;  %s57_s19 = ssub.s32 %s1594_s13, %s2615_s16 }
   0x9   : > { %p76_p5 = scmp.eq.s32.totalorder %s1423_s15, 0  ;;  %p60_p6 = scmp.eq.s32.totalorder %s57_s19, 0 }
   0xa   : > { %p1462_p8 = scmp.lt.s32.totalorder %s1598_s14, 2  ;;  %s132_s22 = sand.u32 1, %s1586_s11  }
   0xb   : > { %p1662_p7 = por %p76_p5, %p75_p4  ;;  %s1455_s23 = sshll.u32 %s1594_s13, 9 }
   0xc   : > { %s1668_s21 = scalar_select %p60_p6, %s1586_s11, %s62_s17  }
   0xd   : > { %s1427_s24 = sshll.u32 %s132_s22, 5  ;;  %s1675_s27 = scalar_lea.hbm %s2508_s1, %s1455_s23 }
   0xe   : > { %s136_s28 = scalar_lea.vmem [#allocation5], %s1427_s24  ;;  %p1679_p9 = pnand %p1462_p8, %p1655_p3 }
   0xf   : > { %s146_s29 = sshll.u32 %s136_s28, 4  ;;  %s133_s3 = scalar_lea.sflag [#allocation6], %s132_s22  ;;  %s1683_s29 = int_to_ptr.vmem [resolvable:$true] %s146_s29 }
  0x10   : > { %s1518_s4 = scalar_lea.hbm %s1675_s27, 512  ;;  %p1520_p13 = pneg %p1679_p9 }
  0x11   : > { %p1519_p12 = scmp.ne.s32.totalorder %s1675_s27, %s1518_s4  ;;  %s1523_s7 = scalar_lea.hbm %s2508_s1, 1024 }
  0x12   : > { %p1524_p2 = scmp.lt.u32.totalorder %s1675_s27, %s2508_s1  ;;  %p1525_p3 = scmp.lt.u32.totalorder %s1523_s7, %s1518_s4 }
  0x13   : > { %p1521_p0 = pnand %p1520_p13, %p1519_p12  ;;  %p1527_p5 = scmp.lt.u32.totalorder %s1518_s4, %s1675_s27 }
  0x14   : > { %p1526_p4 = por %p1525_p3, %p1524_p2 }
  0x15   : > { %p1522_p1 = pneg %p1521_p0 }
  0x16   : > { %p1528_p6 = por %p1527_p5, %p1526_p4 }
  0x18   : > { %p1529_p8 = pnand %p1528_p6, %p1522_p1 }
  0x1a   : > { %1532 = shalt.err (!%p1529_p8)
}
  0x1b   : > { %s1533_s15 = scalar_lea.vmem %s1683_s29, 512  ;;  %s1600_s17 = smov [#allocation5]  }
  0x1c   : > { %p1534_p12 = scmp.ne.s32.totalorder %s1683_s29, %s1533_s15  ;;  %s1538_s18 = sshll.u32 %s1600_s17, 4  ;;  %s1539_s18 = int_to_ptr.vmem [resolvable:$false] %s1538_s18 }
  0x1d   : > { %s1540_s19 = scalar_lea.vmem %s1539_s18, 1024  ;;  %p1541_p11 = scmp.lt.s32.totalorder %s1683_s29, %s1539_s18 }
  0x1e   : > { %p1536_p0 = pnand %p1534_p12, %p1520_p13  ;;  %p1542_p2 = scmp.lt.s32.totalorder %s1540_s19, %s1533_s15 }
  0x20   : > { %p1537_p10 = pneg %p1536_p0  ;;  %p1543_p3 = por %p1542_p2, %p1541_p11 }
  0x22   : > { %p1544_p4 = pnand %p1543_p3, %p1537_p10 }
  0x24   : > { %1547 = shalt.err (!%p1544_p4)
}
  0x25   : > { %1461 = dma.hbm_to_vmem [thread:$0]  (!%p1679_p9), %s1675_s27, 512, %s1683_s29, %s133_s3  }
  0x26   : > { %p2516_p1 = scmp.lt.s32.totalorder %s1598_s14, 3  ;;  %p2517_p5 = scmp.ge.s32.totalorder %s1598_s14, 1 }
  0x28   : > { %p152_p13 = pnand %p2517_p5, %p2516_p1 }
  0x2a   : > { %155 = sbr.rel (%p152_p13) target bundleno = 549 (0x225), region = 28 }
  0x31   : > { %s157_s22 = sand.u32 1, %s1582_s10  }
  0x32   : > { %s1431_s23 = sshll.u32 %s157_s22, 5  ;;  %s158_s24 = scalar_lea.sflag [#allocation6], %s157_s22 }
  0x33   : > { %s1717_s25 = scalar_lea.vmem [#allocation5], %s1431_s23 }
  0x34   : > { %1573 = dma.done.wait (%p1662_p7), %s158_s24, 512  }
  0x35   : > { %1575 = vsyncadd (%p1662_p7), %s158_s24, 4294966784  ;;  %p184_p10 = scmp.lt.s32.totalorder %s1590_s12, 1  ;;  %v1601_v0 = vmov 0   ;;  %v225_v17 = vld [vmem:[%s1717_s25] sm:$0xff]  ;;  %v226_v18 = vld [vmem:[%s1717_s25 + $0x8] sm:$0xff]  ;;  %v2510_v21 = vmov 0.0  }
  0x36   : > { %1515 = vset.pattern.permute.xlu1 %v1601_v0  ;;  %1514 = vset.pattern.permute.xlu0 %v1601_v0  ;;  %v227_v19 = vld [vmem:[%s1717_s25 + $0x10] sm:$0xff]  ;;  %v228_v20 = vld [vmem:[%s1717_s25 + $0x18] sm:$0xff]  ;;  %vm229_vm0 = vcmp.ge.f32.partialorder %v225_v17, 0.001  ;;  %vm230_vm1 = vcmp.ge.f32.partialorder %v226_v18, 0.001 }
  0x37   : > { %s2617_s12 = smov (!%p184_p10, %s1590_s12), 1  ;;  %vm231_vm2 = vcmp.ge.f32.partialorder %v227_v19, 0.001  ;;  %vm232_vm3 = vcmp.ge.f32.partialorder %v228_v20, 0.001  ;;  %v1737_v22 = vsel %vm229_vm0, 1.0, %v2510_v21 }
  0x38   : > { %s1432_s26 = sshll.u32 %s2617_s12, 4  ;;  %v1741_v23 = vsel %vm230_vm1, 1.0, %v2510_v21  ;;  %v1745_v24 = vsel %vm231_vm2, 1.0, %v2510_v21  ;;  %v1749_v25 = vsel %vm232_vm3, 1.0, %v2510_v21  ;;  %v1185_v26 = vrot.slane %v1737_v22, 4  ;;  %s190_s3 = scalar_lea.vmem %s2509_s2, %s2617_s12 }
  0x39   : > { %s187_s29 = scalar_lea.vmem %s2507_s0, %s1432_s26  ;;  %2518 = vst [vmem:[#allocation8_spill] sm:$0xff] %v1749_v25  ;;  %v1191_v27 = vrot.slane %v1741_v23, 4  ;;  %v1197_v28 = vrot.slane %v1745_v24, 4  ;;  %v1203_v29 = vrot.slane %v1749_v25, 4  ;;  %v1768_v42 = vsel %vm229_vm0, %v225_v17, -1000000.0 }
  0x3a   : > { %v1439_v1 = vld [vmem:[%s187_s29 + $0x2] ss:$0 sm:$0xff]  ;;  %v1437_v2 = vld [vmem:[%s187_s29] ss:$0 sm:$0xff]  ;;  %v1440_v3 = vld [vmem:[%s187_s29 + $0x3] ss:$0 sm:$0xff]  ;;  %v1186_v30 = vadd.f32 %v1737_v22, %v1185_v26 }
  0x3b   : > { %334 = vperm.xlu1 %1515, %v1439_v1   ;;  %326 = vperm.xlu0 %1514, %v1437_v2   ;;  %v1438_v4 = vld [vmem:[%s187_s29 + $0x1] ss:$0 sm:$0xff]  ;;  %v1442_v5 = vld [vmem:[%s187_s29 + $0x5] ss:$0 sm:$0xff]  ;;  %v1441_v6 = vld [vmem:[%s187_s29 + $0x4] ss:$0 sm:$0xff]  ;;  %v1192_v31 = vadd.f32 %v1741_v23, %v1191_v27  ;;  %v1198_v32 = vadd.f32 %v1745_v24, %v1197_v28  ;;  %v1204_v33 = vadd.f32 %v1749_v25, %v1203_v29 }
  0x3c   : > { %v1444_v7 = vld [vmem:[%s187_s29 + $0x7] ss:$0 sm:$0xff]  ;;  %v1443_v8 = vld [vmem:[%s187_s29 + $0x6] ss:$0 sm:$0xff]  ;;  %v1446_v9 = vld [vmem:[%s187_s29 + $0x9] ss:$0 sm:$0xff] }
  0x3d   : > { %v1445_v10 = vld [vmem:[%s187_s29 + $0x8] ss:$0 sm:$0xff]  ;;  %v1448_v11 = vld [vmem:[%s187_s29 + $0xb] ss:$0 sm:$0xff]  ;;  %v1447_v12 = vld [vmem:[%s187_s29 + $0xa] ss:$0 sm:$0xff] }
  0x3e   : > { %v1450_v13 = vld [vmem:[%s187_s29 + $0xd] ss:$0 sm:$0xff]  ;;  %v1449_v14 = vld [vmem:[%s187_s29 + $0xc] ss:$0 sm:$0xff]  ;;  %v1452_v15 = vld [vmem:[%s187_s29 + $0xf] ss:$0 sm:$0xff] }
  0x3f   : > { %338 = vperm.xlu1 %1515, %v1440_v3   ;;  %330 = vperm.xlu0 %1514, %v1438_v4   ;;  %v1451_v16 = vld [vmem:[%s187_s29 + $0xe] ss:$0 sm:$0xff]  ;;  %v1187_v34 = vrot.slane %v1186_v30, 2  ;;  %v1193_v35 = vrot.slane %v1192_v31, 2  ;;  %v1199_v36 = vrot.slane %v1198_v32, 2  ;;  %v1205_v37 = vrot.slane %v1204_v33, 2 }
  0x40   : > { %v1771_v43 = vsel %vm230_vm1, %v226_v18, -1000000.0  ;;  %v1774_v44 = vsel %vm231_vm2, %v227_v19, -1000000.0  ;;  %v1777_v45 = vsel %vm232_vm3, %v228_v20, -1000000.0 }
  0x41   : > { %v1759_v38 = vadd.f32 %v1187_v34, %v1186_v30  ;;  %v1761_v39 = vadd.f32 %v1193_v35, %v1192_v31  ;;  %v1763_v40 = vadd.f32 %v1199_v36, %v1198_v32  ;;  %v1765_v41 = vadd.f32 %v1205_v37, %v1204_v33 }
  0x42   : > { %vm973_vm4 = vcmask 1041409   ;;  %vm975_vm5 = vcmask 1042434   ;;  %vm977_vm6 = vcmask 1043459   ;;  %vm979_vm7 = vcmask 1044484  }
  0x43   : > { %346 = vperm.xlu1 %1515, %v1442_v5   ;;  %342 = vperm.xlu0 %1514, %v1441_v6   ;;  %v1189_v48 = vrot.slane %v1759_v38, 1  ;;  %v1195_v49 = vrot.slane %v1761_v39, 1  ;;  %v1201_v50 = vrot.slane %v1763_v40, 1  ;;  %v1207_v51 = vrot.slane %v1765_v41, 1 }
  0x44   : > { %vm981_vm8 = vcmask 1045509   ;;  %vm983_vm9 = vcmask 1046534   ;;  %vm985_vm10 = vcmask 1047559   ;;  %vm1292_vm12 = vcmask 1040384  }
  0x45   : > { %vm1339_vm14 = vcmask 0  }
  0x47   : > { %354 = vperm.xlu1 %1515, %v1444_v7   ;;  %350 = vperm.xlu0 %1514, %v1443_v8  }
  0x4b   : > { %362 = vperm.xlu1 %1515, %v1446_v9   ;;  %358 = vperm.xlu0 %1514, %v1445_v10  }
  0x4f   : > { %370 = vperm.xlu1 %1515, %v1448_v11   ;;  %366 = vperm.xlu0 %1514, %v1447_v12  }
  0x53   : > { %378 = vperm.xlu1 %1515, %v1450_v13   ;;  %374 = vperm.xlu0 %1514, %v1449_v14  }
  0x57   : > { %386 = vperm.xlu1 %1515, %v1452_v15   ;;  %382 = vperm.xlu0 %1514, %v1451_v16  }
  0xba   : > { %v335_v46 = vpop.permute.xlu1 %334  ;;  %v327_v47 = vpop.permute.xlu0 %326 }
  0xbb   : > { %v397_v52 = vsub.f32 %v335_v46, %v1768_v42  ;;  %v398_v53 = vsub.f32 %v335_v46, %v1771_v43  ;;  %v399_v54 = vsub.f32 %v335_v46, %v1774_v44  ;;  %v400_v55 = vsub.f32 %v335_v46, %v1777_v45 }
  0xbc   : > { %v389_v56 = vsub.f32 %v327_v47, %v1768_v42  ;;  %v390_v57 = vsub.f32 %v327_v47, %v1771_v43  ;;  %v391_v58 = vsub.f32 %v327_v47, %v1774_v44  ;;  %v392_v59 = vsub.f32 %v327_v47, %v1777_v45 }
  0xbd   : > { %v1791_v60 = vmul.f32 %v397_v52, %v397_v52  ;;  %v1793_v61 = vmul.f32 %v398_v53, %v398_v53  ;;  %v1795_v62 = vmul.f32 %v399_v54, %v399_v54  ;;  %v1797_v63 = vmul.f32 %v400_v55, %v400_v55 }
  0xbe   : > { %v1799_v0 = vmul.f32 %v389_v56, %v389_v56  ;;  %v1801_v1 = vmul.f32 %v390_v57, %v390_v57  ;;  %v1803_v2 = vmul.f32 %v391_v58, %v391_v58  ;;  %v1805_v3 = vmul.f32 %v392_v59, %v392_v59  ;;  %v339_v56 = vpop.permute.xlu1 %338 }
  0xbf   : > { %v573_v4 = vrot.slane %v1791_v60, 4  ;;  %v579_v5 = vrot.slane %v1793_v61, 4  ;;  %v585_v6 = vrot.slane %v1795_v62, 4  ;;  %v591_v7 = vrot.slane %v1797_v63, 4 }
  0xc0   : > { %v525_v8 = vrot.slane %v1799_v0, 4  ;;  %v531_v9 = vrot.slane %v1801_v1, 4  ;;  %v537_v10 = vrot.slane %v1803_v2, 4  ;;  %v543_v11 = vrot.slane %v1805_v3, 4 }
  0xc1   : > { %v574_v12 = vmin.f32 %v1791_v60, %v573_v4  ;;  %v580_v13 = vmin.f32 %v1793_v61, %v579_v5  ;;  %v586_v14 = vmin.f32 %v1795_v62, %v585_v6  ;;  %v592_v15 = vmin.f32 %v1797_v63, %v591_v7 }
  0xc2   : > { %v526_v16 = vmin.f32 %v1799_v0, %v525_v8  ;;  %v532_v17 = vmin.f32 %v1801_v1, %v531_v9  ;;  %v538_v18 = vmin.f32 %v1803_v2, %v537_v10  ;;  %v544_v19 = vmin.f32 %v1805_v3, %v543_v11  ;;  %v331_v9 = vpop.permute.xlu0 %330 }
  0xc3   : > { %v575_v20 = vrot.slane %v574_v12, 2  ;;  %v581_v26 = vrot.slane %v580_v13, 2  ;;  %v587_v27 = vrot.slane %v586_v14, 2  ;;  %v593_v28 = vrot.slane %v592_v15, 2 }
  0xc4   : > { %v527_v29 = vrot.slane %v526_v16, 2  ;;  %v533_v30 = vrot.slane %v532_v17, 2  ;;  %v539_v31 = vrot.slane %v538_v18, 2  ;;  %v545_v32 = vrot.slane %v544_v19, 2 }
  0xc5   : > { %v576_v33 = vmin.f32 %v574_v12, %v575_v20  ;;  %v582_v34 = vmin.f32 %v580_v13, %v581_v26  ;;  %v588_v35 = vmin.f32 %v586_v14, %v587_v27  ;;  %v1823_v36 = vmin.f32 %v592_v15, %v593_v28 }
  0xc6   : > { %v1825_v37 = vmin.f32 %v526_v16, %v527_v29  ;;  %v1827_v46 = vmin.f32 %v532_v17, %v533_v30  ;;  %v1829_v47 = vmin.f32 %v538_v18, %v539_v31  ;;  %v1831_v52 = vmin.f32 %v544_v19, %v545_v32 }
  0xc7   : > { %v577_v53 = vrot.slane %v576_v33, 1  ;;  %v583_v54 = vrot.slane %v582_v34, 1  ;;  %v589_v55 = vrot.slane %v588_v35, 1  ;;  %v1834_v57 = vadd.f32 %v1189_v48, %v1759_v38 }
  0xc8   : > { %v1837_v58 = vadd.f32 %v1195_v49, %v1761_v39  ;;  %v1840_v59 = vadd.f32 %v1201_v50, %v1763_v40  ;;  %v1843_v4 = vadd.f32 %v1207_v51, %v1765_v41  ;;  %v595_v5 = vrot.slane %v1823_v36, 1 }
  0xc9   : > { %2519 = vst [vmem:[#allocation9_spill] sm:$0xff] %v1834_v57  ;;  %v529_v6 = vrot.slane %v1825_v37, 1  ;;  %v535_v7 = vrot.slane %v1827_v46, 1  ;;  %v541_v8 = vrot.slane %v1829_v47, 1  ;;  %v1849_v38 = vmin.f32 %v576_v33, %v577_v53 }
  0xca   : > { %2520 = vst [vmem:[#allocation10_spill] sm:$0xff] %v1837_v58  ;;  %2521 = vst [vmem:[#allocation11_spill] sm:$0xff] %v1840_v59  ;;  %v1851_v48 = vmin.f32 %v582_v34, %v583_v54  ;;  %v1853_v39 = vmin.f32 %v588_v35, %v589_v55  ;;  %v547_v40 = vrot.slane %v1831_v52, 1  ;;  %v401_v41 = vsub.f32 %v339_v56, %v1768_v42 }
  0xcb   : > { %2522 = vst [vmem:[#allocation12_spill] sm:$0xff] %v1843_v4  ;;  %2523 = vst [vmem:[#allocation13_spill] sm:$0xff] %v1849_v38  ;;  %v402_v49 = vsub.f32 %v339_v56, %v1771_v43  ;;  %v403_v50 = vsub.f32 %v339_v56, %v1774_v44  ;;  %v404_v51 = vsub.f32 %v339_v56, %v1777_v45 }
  0xcc   : > { %2524 = vst [vmem:[#allocation14_spill] sm:$0xff] %v1851_v48  ;;  %2525 = vst [vmem:[#allocation15_spill] sm:$0xff] %v1853_v39  ;;  %v393_v10 = vsub.f32 %v331_v9, %v1768_v42  ;;  %v394_v11 = vsub.f32 %v331_v9, %v1771_v43  ;;  %v395_v12 = vsub.f32 %v331_v9, %v1774_v44 }
  0xcd   : > { %v396_v13 = vsub.f32 %v331_v9, %v1777_v45  ;;  %v1864_v14 = vmul.f32 %v401_v41, %v401_v41  ;;  %v1866_v15 = vmul.f32 %v402_v49, %v402_v49  ;;  %v1868_v16 = vmul.f32 %v403_v50, %v403_v50 }
  0xce   : > { %v1870_v17 = vmul.f32 %v404_v51, %v404_v51  ;;  %v1872_v18 = vmul.f32 %v393_v10, %v393_v10  ;;  %v1874_v19 = vmul.f32 %v394_v11, %v394_v11  ;;  %v1876_v20 = vmul.f32 %v395_v12, %v395_v12 }
  0xcf   : > { %v1878_v26 = vmul.f32 %v396_v13, %v396_v13  ;;  %v597_v27 = vrot.slane %v1864_v14, 4  ;;  %v603_v28 = vrot.slane %v1866_v15, 4  ;;  %v609_v29 = vrot.slane %v1868_v16, 4 }
  0xd0   : > { %v615_v30 = vrot.slane %v1870_v17, 4  ;;  %v549_v31 = vrot.slane %v1872_v18, 4  ;;  %v555_v32 = vrot.slane %v1874_v19, 4  ;;  %v561_v33 = vrot.slane %v1876_v20, 4 }
  0xd1   : > { %v567_v34 = vrot.slane %v1878_v26, 4  ;;  %v598_v35 = vmin.f32 %v1864_v14, %v597_v27  ;;  %v604_v53 = vmin.f32 %v1866_v15, %v603_v28  ;;  %v610_v54 = vmin.f32 %v1868_v16, %v609_v29 }
  0xd2   : > { %v616_v55 = vmin.f32 %v1870_v17, %v615_v30  ;;  %v550_v56 = vmin.f32 %v1872_v18, %v549_v31  ;;  %v556_v9 = vmin.f32 %v1874_v19, %v555_v32  ;;  %v562_v41 = vmin.f32 %v1876_v20, %v561_v33 }
  0xd3   : > { %v568_v49 = vmin.f32 %v1878_v26, %v567_v34  ;;  %v599_v50 = vrot.slane %v598_v35, 2  ;;  %v605_v51 = vrot.slane %v604_v53, 2  ;;  %v611_v10 = vrot.slane %v610_v54, 2 }
  0xd4   : > { %v617_v11 = vrot.slane %v616_v55, 2  ;;  %v551_v12 = vrot.slane %v550_v56, 2  ;;  %v557_v13 = vrot.slane %v556_v9, 2  ;;  %v563_v27 = vrot.slane %v562_v41, 2 }
  0xd5   : > { %v569_v28 = vrot.slane %v568_v49, 2  ;;  %v600_v21 = vmin.f32 %v598_v35, %v599_v50  ;;  %v606_v29 = vmin.f32 %v604_v53, %v605_v51  ;;  %v612_v59 = vmin.f32 %v610_v54, %v611_v10 }
  0xd6   : > { %v618_v30 = vmin.f32 %v616_v55, %v617_v11  ;;  %v552_v4 = vmin.f32 %v550_v56, %v551_v12  ;;  %v558_v31 = vmin.f32 %v556_v9, %v557_v13  ;;  %v564_v57 = vmin.f32 %v562_v41, %v563_v27  ;;  %v347_v9 = vpop.permute.xlu1 %346 }
  0xd7   : > { %v570_v32 = vmin.f32 %v568_v49, %v569_v28  ;;  %v601_v58 = vrot.slane %v600_v21, 1  ;;  %v607_v33 = vrot.slane %v606_v29, 1  ;;  %v613_v39 = vrot.slane %v612_v59, 1 }
  0xd8   : > { %v619_v34 = vrot.slane %v618_v30, 1  ;;  %v1897_v48 = vmin.f32 %v1823_v36, %v595_v5  ;;  %v1900_v38 = vmin.f32 %v1825_v37, %v529_v6  ;;  %v1903_v25 = vmin.f32 %v1827_v46, %v535_v7 }
  0xd9   : > { %v1906_v35 = vmin.f32 %v1829_v47, %v541_v8  ;;  %v553_v53 = vrot.slane %v552_v4, 1  ;;  %v559_v54 = vrot.slane %v558_v31, 1  ;;  %v565_v55 = vrot.slane %v564_v57, 1 }
  0xda   : > { %2526 = vst [vmem:[#allocation16_spill] sm:$0xff] %v1897_v48  ;;  %2527 = vst [vmem:[#allocation17_spill] sm:$0xff] %v1903_v25  ;;  %v571_v56 = vrot.slane %v570_v32, 1  ;;  %v1909_v41 = vmin.f32 %v1831_v52, %v547_v40  ;;  %v1911_v49 = vmin.f32 %v600_v21, %v601_v58  ;;  %v1913_v36 = vmin.f32 %v606_v29, %v607_v33 }
  0xdb   : > { %2528 = vst [vmem:[#allocation18_spill] sm:$0xff] %v1906_v35  ;;  %v1915_v37 = vmin.f32 %v612_v59, %v613_v39  ;;  %v1917_v5 = vmin.f32 %v618_v30, %v619_v34  ;;  %v1060_v46 = vmin.f32 %v1799_v0, %v1872_v18  ;;  %v1075_v47 = vmin.f32 %v1801_v1, %v1874_v19  ;;  %v343_v19 = vpop.permute.xlu0 %342 }
  0xdc   : > { %2529 = vst [vmem:[#allocation19_spill] sm:$0xff] %v1909_v41  ;;  %2530 = vst [vmem:[#allocation20_spill] sm:$0xff] %v1911_v49  ;;  %v1090_v6 = vmin.f32 %v1803_v2, %v1876_v20  ;;  %v409_v52 = vsub.f32 %v347_v9, %v1768_v42  ;;  %v410_v21 = vsub.f32 %v347_v9, %v1771_v43 }
  0xdd   : > { %2531 = vst [vmem:[#allocation21_spill] sm:$0xff] %v1913_v36  ;;  %2532 = vst [vmem:[#allocation22_spill] sm:$0xff] %v1915_v37  ;;  %v411_v58 = vsub.f32 %v347_v9, %v1774_v44  ;;  %v412_v59 = vsub.f32 %v347_v9, %v1777_v45  ;;  %v1929_v7 = vmin.f32 %v552_v4, %v553_v53 }
  0xde   : > { %2533 = vst [vmem:[#allocation23_spill] sm:$0xff] %v1917_v5  ;;  %v1931_v8 = vmin.f32 %v558_v31, %v559_v54  ;;  %v1933_v39 = vmin.f32 %v564_v57, %v565_v55  ;;  %v1935_v0 = vmin.f32 %v570_v32, %v571_v56  ;;  %v1937_v1 = vmul.f32 %v409_v52, %v409_v52 }
  0xdf   : > { %v1939_v40 = vmul.f32 %v410_v21, %v410_v21  ;;  %v1941_v2 = vmul.f32 %v411_v58, %v411_v58  ;;  %v1943_v18 = vmul.f32 %v412_v59, %v412_v59  ;;  %v1061_v20 = vmin.f32 %v1060_v46, %v1791_v60 }
  0xe0   : > { %2534 = vst [vmem:[#allocation24_spill] sm:$0xff] %v1931_v8  ;;  %2535 = vst [vmem:[#allocation25_spill] sm:$0xff] %v1933_v39  ;;  %v1076_v4 = vmin.f32 %v1075_v47, %v1793_v61  ;;  %v1091_v50 = vmin.f32 %v1090_v6, %v1795_v62  ;;  %v1105_v57 = vmin.f32 %v1805_v3, %v1878_v26  ;;  %v645_v51 = vrot.slane %v1937_v1, 4 }
  0xe1   : > { %2536 = vst [vmem:[#allocation26_spill] sm:$0xff] %v1935_v0  ;;  %v651_v10 = vrot.slane %v1939_v40, 4  ;;  %v657_v11 = vrot.slane %v1941_v2, 4  ;;  %v663_v12 = vrot.slane %v1943_v18, 4  ;;  %v405_v13 = vsub.f32 %v343_v19, %v1768_v42 }
  0xe2   : > { %v406_v27 = vsub.f32 %v343_v19, %v1771_v43  ;;  %v407_v60 = vsub.f32 %v343_v19, %v1774_v44  ;;  %v408_v61 = vsub.f32 %v343_v19, %v1777_v45  ;;  %v646_v62 = vmin.f32 %v1937_v1, %v645_v51 }
  0xe3   : > { %v652_v3 = vmin.f32 %v1939_v40, %v651_v10  ;;  %v658_v26 = vmin.f32 %v1941_v2, %v657_v11  ;;  %v664_v28 = vmin.f32 %v1943_v18, %v663_v12  ;;  %v469_v29 = vmul.f32 %v405_v13, %v405_v13 }
  0xe4   : > { %v470_v30 = vmul.f32 %v406_v27, %v406_v27  ;;  %v471_v31 = vmul.f32 %v407_v60, %v407_v60  ;;  %v472_v32 = vmul.f32 %v408_v61, %v408_v61  ;;  %v1106_v33 = vmin.f32 %v1105_v57, %v1797_v63 }
  0xe5   : > { %v647_v34 = vrot.slane %v646_v62, 2  ;;  %v653_v53 = vrot.slane %v652_v3, 2  ;;  %v659_v54 = vrot.slane %v658_v26, 2  ;;  %v621_v55 = vrot.slane %v469_v29, 4 }
  0xe6   : > { %v627_v56 = vrot.slane %v470_v30, 4  ;;  %v633_v9 = vrot.slane %v471_v31, 4  ;;  %v639_v46 = vrot.slane %v472_v32, 4  ;;  %v665_v47 = vrot.slane %v664_v28, 2 }
  0xe7   : > { %v1062_v6 = vmin.f32 %v1061_v20, %v1864_v14  ;;  %v1077_v52 = vmin.f32 %v1076_v4, %v1866_v15  ;;  %v1092_v21 = vmin.f32 %v1091_v50, %v1868_v16  ;;  %v622_v58 = vmin.f32 %v469_v29, %v621_v55  ;;  %v355_v20 = vpop.permute.xlu1 %354 }
  0xe8   : > { %v628_v59 = vmin.f32 %v470_v30, %v627_v56  ;;  %v634_v19 = vmin.f32 %v471_v31, %v633_v9  ;;  %v640_v51 = vmin.f32 %v472_v32, %v639_v46  ;;  %v1966_v10 = vmin.f32 %v646_v62, %v647_v34 }
  0xe9   : > { %v1968_v63 = vmin.f32 %v652_v3, %v653_v53  ;;  %v1970_v57 = vmin.f32 %v658_v26, %v659_v54  ;;  %v1107_v11 = vmin.f32 %v1106_v33, %v1870_v17  ;;  %v623_v12 = vrot.slane %v622_v58, 2 }
  0xea   : > { %v629_v13 = vrot.slane %v628_v59, 2  ;;  %v635_v27 = vrot.slane %v634_v19, 2  ;;  %v641_v14 = vrot.slane %v640_v51, 2  ;;  %v1973_v15 = vmin.f32 %v664_v28, %v665_v47 }
  0xeb   : > { %v1975_v16 = vmin.f32 %v1062_v6, %v469_v29  ;;  %v1977_v4 = vmin.f32 %v1077_v52, %v470_v30  ;;  %v1979_v50 = vmin.f32 %v1092_v21, %v471_v31  ;;  %v624_v60 = vmin.f32 %v622_v58, %v623_v12 }
  0xec   : > { %v630_v61 = vmin.f32 %v628_v59, %v629_v13  ;;  %v636_v62 = vmin.f32 %v634_v19, %v635_v27  ;;  %v642_v3 = vmin.f32 %v640_v51, %v641_v14  ;;  %v417_v26 = vsub.f32 %v355_v20, %v1768_v42  ;;  %v351_v19 = vpop.permute.xlu0 %350 }
  0xed   : > { %v418_v17 = vsub.f32 %v355_v20, %v1771_v43  ;;  %v419_v33 = vsub.f32 %v355_v20, %v1774_v44  ;;  %v420_v34 = vsub.f32 %v355_v20, %v1777_v45  ;;  %v625_v28 = vrot.slane %v624_v60, 1 }
  0xee   : > { %v631_v53 = vrot.slane %v630_v61, 1  ;;  %v637_v29 = vrot.slane %v636_v62, 1  ;;  %v643_v54 = vrot.slane %v642_v3, 1  ;;  %v1985_v30 = vmul.f32 %v417_v26, %v417_v26 }
  0xef   : > { %v1987_v31 = vmul.f32 %v418_v17, %v418_v17  ;;  %v1989_v55 = vmul.f32 %v419_v33, %v419_v33  ;;  %v1991_v56 = vmul.f32 %v420_v34, %v420_v34  ;;  %v2001_v51 = vmin.f32 %v624_v60, %v625_v28 }
  0xf0   : > { %v693_v52 = vrot.slane %v1985_v30, 4  ;;  %v2003_v12 = vmin.f32 %v630_v61, %v631_v53  ;;  %v2005_v13 = vmin.f32 %v636_v62, %v637_v29  ;;  %v1108_v27 = vmin.f32 %v1107_v11, %v472_v32  ;;  %v363_v32 = vpop.permute.xlu1 %362 }
  0xf1   : > { %v699_v21 = vrot.slane %v1987_v31, 4  ;;  %v705_v58 = vrot.slane %v1989_v55, 4  ;;  %v711_v59 = vrot.slane %v1991_v56, 4  ;;  %2537 = vst [vmem:[#allocation27_spill] sm:$0xff] %v2001_v51  ;;  %v2007_v14 = vmin.f32 %v642_v3, %v643_v54 }
  0xf2   : > { %2538 = vst [vmem:[#allocation28_spill] sm:$0xff] %v2003_v12  ;;  %2539 = vst [vmem:[#allocation29_spill] sm:$0xff] %v2005_v13  ;;  %v1064_v20 = vmin.f32 %v1975_v16, %v1937_v1  ;;  %v1079_v26 = vmin.f32 %v1977_v4, %v1939_v40  ;;  %v1094_v17 = vmin.f32 %v1979_v50, %v1941_v2  ;;  %v359_v12 = vpop.permute.xlu0 %358 }
  0xf3   : > { %2540 = vst [vmem:[#allocation30_spill] sm:$0xff] %v2007_v14  ;;  %v413_v33 = vsub.f32 %v351_v19, %v1768_v42  ;;  %v414_v60 = vsub.f32 %v351_v19, %v1771_v43  ;;  %v415_v61 = vsub.f32 %v351_v19, %v1774_v44  ;;  %v416_v62 = vsub.f32 %v351_v19, %v1777_v45 }
  0xf4   : > { %v2020_v11 = vmin.f32 %v1985_v30, %v693_v52  ;;  %v2023_v1 = vmin.f32 %v1987_v31, %v699_v21  ;;  %v2026_v40 = vmin.f32 %v1989_v55, %v705_v58  ;;  %v2029_v2 = vmin.f32 %v1991_v56, %v711_v59 }
  0xf5   : > { %v477_v16 = vmul.f32 %v413_v33, %v413_v33  ;;  %v478_v4 = vmul.f32 %v414_v60, %v414_v60  ;;  %v479_v50 = vmul.f32 %v415_v61, %v415_v61  ;;  %v480_v3 = vmul.f32 %v416_v62, %v416_v62 }
  0xf6   : > { %v425_v34 = vsub.f32 %v363_v32, %v1768_v42  ;;  %v426_v28 = vsub.f32 %v363_v32, %v1771_v43  ;;  %v427_v53 = vsub.f32 %v363_v32, %v1774_v44  ;;  %v428_v29 = vsub.f32 %v363_v32, %v1777_v45 }
  0xf7   : > { %v669_v54 = vrot.slane %v477_v16, 4  ;;  %v675_v52 = vrot.slane %v478_v4, 4  ;;  %v681_v21 = vrot.slane %v479_v50, 4  ;;  %v687_v58 = vrot.slane %v480_v3, 4 }
  0xf8   : > { %v1109_v60 = vmin.f32 %v1108_v27, %v1943_v18  ;;  %v2039_v46 = vmul.f32 %v425_v34, %v425_v34  ;;  %v2041_v9 = vmul.f32 %v426_v28, %v426_v28  ;;  %v2043_v32 = vmul.f32 %v427_v53, %v427_v53 }
  0xf9   : > { %v670_v61 = vmin.f32 %v477_v16, %v669_v54  ;;  %v676_v62 = vmin.f32 %v478_v4, %v675_v52  ;;  %v682_v6 = vmin.f32 %v479_v50, %v681_v21  ;;  %v688_v47 = vmin.f32 %v480_v3, %v687_v58 }
  0xfa   : > { %v2045_v14 = vmul.f32 %v428_v29, %v428_v29  ;;  %v741_v33 = vrot.slane %v2039_v46, 4  ;;  %v747_v18 = vrot.slane %v2041_v9, 4  ;;  %v753_v27 = vrot.slane %v2043_v32, 4 }
  0xfb   : > { %v671_v5 = vrot.slane %v670_v61, 2  ;;  %v677_v59 = vrot.slane %v676_v62, 2  ;;  %v683_v13 = vrot.slane %v682_v6, 2  ;;  %v689_v54 = vrot.slane %v688_v47, 2 }
  0xfc   : > { %v759_v34 = vrot.slane %v2045_v14, 4  ;;  %v2052_v28 = vmin.f32 %v1064_v20, %v477_v16  ;;  %v2054_v53 = vmin.f32 %v1079_v26, %v478_v4  ;;  %v2056_v29 = vmin.f32 %v1094_v17, %v479_v50 }
  0xfd   : > { %v742_v52 = vmin.f32 %v2039_v46, %v741_v33  ;;  %v748_v21 = vmin.f32 %v2041_v9, %v747_v18  ;;  %v754_v58 = vmin.f32 %v2043_v32, %v753_v27  ;;  %v2062_v48 = vmin.f32 %v670_v61, %v671_v5 }
  0xfe   : > { %v760_v19 = vmin.f32 %v2045_v14, %v759_v34  ;;  %v2064_v37 = vmin.f32 %v676_v62, %v677_v59  ;;  %v2066_v36 = vmin.f32 %v682_v6, %v683_v13  ;;  %v2068_v20 = vmin.f32 %v1109_v60, %v480_v3 }
  0xff   : > { %v743_v26 = vrot.slane %v742_v52, 2  ;;  %v749_v17 = vrot.slane %v748_v21, 2  ;;  %v755_v16 = vrot.slane %v754_v58, 2  ;;  %v421_v50 = vsub.f32 %v359_v12, %v1768_v42 }
 0x100   : > { %v761_v4 = vrot.slane %v760_v19, 2  ;;  %v422_v33 = vsub.f32 %v359_v12, %v1771_v43  ;;  %v423_v18 = vsub.f32 %v359_v12, %v1774_v44  ;;  %v424_v27 = vsub.f32 %v359_v12, %v1777_v45 }
 0x101   : > { %v2074_v5 = vmin.f32 %v688_v47, %v689_v54  ;;  %v744_v59 = vmin.f32 %v742_v52, %v743_v26  ;;  %v750_v61 = vmin.f32 %v748_v21, %v749_v17  ;;  %v756_v6 = vmin.f32 %v754_v58, %v755_v16  ;;  %v371_v17 = vpop.permute.xlu1 %370 }
 0x102   : > { %v485_v13 = vmul.f32 %v421_v50, %v421_v50  ;;  %v486_v3 = vmul.f32 %v422_v33, %v422_v33  ;;  %v487_v60 = vmul.f32 %v423_v18, %v423_v18  ;;  %v488_v62 = vmul.f32 %v424_v27, %v424_v27 }
 0x103   : > { %v745_v34 = vrot.slane %v744_v59, 1  ;;  %v751_v0 = vrot.slane %v750_v61, 1  ;;  %v757_v41 = vrot.slane %v756_v6, 1  ;;  %v762_v51 = vmin.f32 %v760_v19, %v761_v4 }
 0x104   : > { %v717_v39 = vrot.slane %v485_v13, 4  ;;  %v723_v35 = vrot.slane %v486_v3, 4  ;;  %v729_v8 = vrot.slane %v487_v60, 4  ;;  %v735_v25 = vrot.slane %v488_v62, 4 }
 0x105   : > { %v1066_v12 = vmin.f32 %v2052_v28, %v1985_v30  ;;  %v1081_v47 = vmin.f32 %v2054_v53, %v1987_v31  ;;  %v1096_v54 = vmin.f32 %v2056_v29, %v1989_v55  ;;  %v1111_v52 = vmin.f32 %v2068_v20, %v1991_v56 }
 0x106   : > { %v718_v21 = vmin.f32 %v485_v13, %v717_v39  ;;  %v724_v58 = vmin.f32 %v486_v3, %v723_v35  ;;  %v730_v26 = vmin.f32 %v487_v60, %v729_v8  ;;  %v736_v19 = vmin.f32 %v488_v62, %v735_v25 }
 0x107   : > { %v2084_v16 = vmin.f32 %v744_v59, %v745_v34  ;;  %v2086_v4 = vmin.f32 %v750_v61, %v751_v0  ;;  %v2088_v50 = vmin.f32 %v756_v6, %v757_v41  ;;  %v763_v30 = vrot.slane %v762_v51, 1 }
 0x108   : > { %v719_v28 = vrot.slane %v718_v21, 2  ;;  %v725_v31 = vrot.slane %v724_v58, 2  ;;  %v731_v53 = vrot.slane %v730_v26, 2  ;;  %v737_v33 = vrot.slane %v736_v19, 2 }
 0x109   : > { %2541 = vst [vmem:[#allocation31_spill] sm:$0xff] %v2084_v16  ;;  %2542 = vst [vmem:[#allocation32_spill] sm:$0xff] %v2086_v4  ;;  %v433_v55 = vsub.f32 %v371_v17, %v1768_v42  ;;  %v434_v56 = vsub.f32 %v371_v17, %v1771_v43  ;;  %v435_v35 = vsub.f32 %v371_v17, %v1774_v44 }
 0x10a   : > { %2543 = vst [vmem:[#allocation33_spill] sm:$0xff] %v2088_v50  ;;  %v436_v25 = vsub.f32 %v371_v17, %v1777_v45  ;;  %v720_v8 = vmin.f32 %v718_v21, %v719_v28  ;;  %v726_v39 = vmin.f32 %v724_v58, %v725_v31  ;;  %v732_v29 = vmin.f32 %v730_v26, %v731_v53 }
 0x10b   : > { %v738_v0 = vmin.f32 %v736_v19, %v737_v33  ;;  %v2094_v20 = vmul.f32 %v433_v55, %v433_v55  ;;  %v2096_v41 = vmul.f32 %v434_v56, %v434_v56  ;;  %v2098_v18 = vmul.f32 %v435_v35, %v435_v35  ;;  %v367_v55 = vpop.permute.xlu0 %366 }
 0x10c   : > { %v2100_v27 = vmul.f32 %v436_v25, %v436_v25  ;;  %v2102_v59 = vmin.f32 %v762_v51, %v763_v30  ;;  %v721_v61 = vrot.slane %v720_v8, 1  ;;  %v727_v6 = vrot.slane %v726_v39, 1 }
 0x10d   : > { %v733_v34 = vrot.slane %v732_v29, 1  ;;  %v789_v50 = vrot.slane %v2094_v20, 4  ;;  %v795_v21 = vrot.slane %v2096_v41, 4  ;;  %v801_v58 = vrot.slane %v2098_v18, 4 }
 0x10e   : > { %2544 = vst [vmem:[#allocation34_spill] sm:$0xff] %v2102_v59  ;;  %v807_v26 = vrot.slane %v2100_v27, 4  ;;  %v739_v19 = vrot.slane %v738_v0, 1  ;;  %v2108_v17 = vmin.f32 %v1066_v12, %v485_v13  ;;  %v2110_v28 = vmin.f32 %v1081_v47, %v486_v3 }
 0x10f   : > { %v2112_v31 = vmin.f32 %v1096_v54, %v487_v60  ;;  %v790_v51 = vmin.f32 %v2094_v20, %v789_v50  ;;  %v796_v30 = vmin.f32 %v2096_v41, %v795_v21  ;;  %v802_v53 = vmin.f32 %v2098_v18, %v801_v58 }
 0x110   : > { %v808_v33 = vmin.f32 %v2100_v27, %v807_v26  ;;  %v2118_v56 = vmin.f32 %v720_v8, %v721_v61  ;;  %v2120_v35 = vmin.f32 %v726_v39, %v727_v6  ;;  %v2122_v25 = vmin.f32 %v732_v29, %v733_v34 }
 0x111   : > { %v2124_v13 = vmin.f32 %v1111_v52, %v488_v62  ;;  %v791_v3 = vrot.slane %v790_v51, 2  ;;  %v797_v60 = vrot.slane %v796_v30, 2  ;;  %v803_v12 = vrot.slane %v802_v53, 2 }
 0x112   : > { %2545 = vst [vmem:[#allocation35_spill] sm:$0xff] %v2118_v56  ;;  %2546 = vst [vmem:[#allocation36_spill] sm:$0xff] %v2120_v35  ;;  %v809_v47 = vrot.slane %v808_v33, 2  ;;  %v429_v54 = vsub.f32 %v367_v55, %v1768_v42  ;;  %v430_v50 = vsub.f32 %v367_v55, %v1771_v43  ;;  %v431_v21 = vsub.f32 %v367_v55, %v1774_v44 }
 0x113   : > { %2547 = vst [vmem:[#allocation37_spill] sm:$0xff] %v2122_v25  ;;  %v432_v58 = vsub.f32 %v367_v55, %v1777_v45  ;;  %v2130_v8 = vmin.f32 %v738_v0, %v739_v19  ;;  %v792_v39 = vmin.f32 %v790_v51, %v791_v3  ;;  %v798_v61 = vmin.f32 %v796_v30, %v797_v60  ;;  %v379_v60 = vpop.permute.xlu1 %378 }
 0x114   : > { %v804_v29 = vmin.f32 %v802_v53, %v803_v12  ;;  %v493_v6 = vmul.f32 %v429_v54, %v429_v54  ;;  %v494_v62 = vmul.f32 %v430_v50, %v430_v50  ;;  %v495_v52 = vmul.f32 %v431_v21, %v431_v21 }
 0x115   : > { %2548 = vst [vmem:[#allocation38_spill] sm:$0xff] %v2130_v8  ;;  %v496_v34 = vmul.f32 %v432_v58, %v432_v58  ;;  %v793_v26 = vrot.slane %v792_v39, 1  ;;  %v799_v59 = vrot.slane %v798_v61, 1  ;;  %v810_v4 = vmin.f32 %v808_v33, %v809_v47 }
 0x116   : > { %v805_v25 = vrot.slane %v804_v29, 1  ;;  %v765_v35 = vrot.slane %v493_v6, 4  ;;  %v771_v16 = vrot.slane %v494_v62, 4  ;;  %v777_v56 = vrot.slane %v495_v52, 4 }
 0x117   : > { %v783_v49 = vrot.slane %v496_v34, 4  ;;  %v1068_v55 = vmin.f32 %v2108_v17, %v2039_v46  ;;  %v1083_v0 = vmin.f32 %v2110_v28, %v2041_v9  ;;  %v1098_v19 = vmin.f32 %v2112_v31, %v2043_v32 }
 0x118   : > { %v1113_v51 = vmin.f32 %v2124_v13, %v2045_v14  ;;  %v766_v30 = vmin.f32 %v493_v6, %v765_v35  ;;  %v772_v53 = vmin.f32 %v494_v62, %v771_v16  ;;  %v778_v3 = vmin.f32 %v495_v52, %v777_v56 }
 0x119   : > { %v784_v33 = vmin.f32 %v496_v34, %v783_v49  ;;  %v2140_v12 = vmin.f32 %v792_v39, %v793_v26  ;;  %v2142_v47 = vmin.f32 %v798_v61, %v799_v59  ;;  %v2144_v54 = vmin.f32 %v804_v29, %v805_v25 }
 0x11a   : > { %v811_v46 = vrot.slane %v810_v4, 1  ;;  %v767_v17 = vrot.slane %v766_v30, 2  ;;  %v773_v9 = vrot.slane %v772_v53, 2  ;;  %v779_v28 = vrot.slane %v778_v3, 2 }
 0x11b   : > { %2549 = vst [vmem:[#allocation39_spill] sm:$0xff] %v2140_v12  ;;  %2550 = vst [vmem:[#allocation40_spill] sm:$0xff] %v2142_v47  ;;  %v785_v50 = vrot.slane %v784_v33, 2  ;;  %v441_v32 = vsub.f32 %v379_v60, %v1768_v42  ;;  %v442_v14 = vsub.f32 %v379_v60, %v1771_v43  ;;  %v443_v16 = vsub.f32 %v379_v60, %v1774_v44 }
 0x11c   : > { %2551 = vst [vmem:[#allocation41_spill] sm:$0xff] %v2144_v54  ;;  %v444_v49 = vsub.f32 %v379_v60, %v1777_v45  ;;  %v768_v31 = vmin.f32 %v766_v30, %v767_v17  ;;  %v774_v56 = vmin.f32 %v772_v53, %v773_v9  ;;  %v780_v35 = vmin.f32 %v778_v3, %v779_v28 }
 0x11d   : > { %v786_v59 = vmin.f32 %v784_v33, %v785_v50  ;;  %v2150_v13 = vmul.f32 %v441_v32, %v441_v32  ;;  %v2152_v25 = vmul.f32 %v442_v14, %v442_v14  ;;  %v2154_v21 = vmul.f32 %v443_v16, %v443_v16  ;;  %v375_v16 = vpop.permute.xlu0 %374 }
 0x11e   : > { %v2156_v58 = vmul.f32 %v444_v49, %v444_v49  ;;  %v769_v39 = vrot.slane %v768_v31, 1  ;;  %v775_v61 = vrot.slane %v774_v56, 1  ;;  %v781_v29 = vrot.slane %v780_v35, 1 }
 0x11f   : > { %v787_v26 = vrot.slane %v786_v59, 1  ;;  %v837_v8 = vrot.slane %v2150_v13, 4  ;;  %v843_v60 = vrot.slane %v2152_v25, 4  ;;  %v849_v30 = vrot.slane %v2154_v21, 4 }
 0x120   : > { %v855_v53 = vrot.slane %v2156_v58, 4  ;;  %v2162_v3 = vmin.f32 %v810_v4, %v811_v46  ;;  %v1069_v33 = vmin.f32 %v1068_v55, %v493_v6  ;;  %v2164_v17 = vmin.f32 %v1083_v0, %v494_v62 }
 0x121   : > { %v2166_v9 = vmin.f32 %v1098_v19, %v495_v52  ;;  %v838_v28 = vmin.f32 %v2150_v13, %v837_v8  ;;  %v844_v50 = vmin.f32 %v2152_v25, %v843_v60  ;;  %v850_v32 = vmin.f32 %v2154_v21, %v849_v30 }
 0x122   : > { %2552 = vst [vmem:[#allocation42_spill] sm:$0xff] %v2162_v3  ;;  %v856_v14 = vmin.f32 %v2156_v58, %v855_v53  ;;  %v2172_v49 = vmin.f32 %v768_v31, %v769_v39  ;;  %v2174_v54 = vmin.f32 %v774_v56, %v775_v61  ;;  %v2176_v4 = vmin.f32 %v780_v35, %v781_v29 }
 0x123   : > { %v2178_v6 = vmin.f32 %v1113_v51, %v496_v34  ;;  %v2180_v62 = vmin.f32 %v786_v59, %v787_v26  ;;  %v839_v52 = vrot.slane %v838_v28, 2  ;;  %v845_v55 = vrot.slane %v844_v50, 2 }
 0x124   : > { %2553 = vst [vmem:[#allocation43_spill] sm:$0xff] %v2174_v54  ;;  %2554 = vst [vmem:[#allocation44_spill] sm:$0xff] %v2176_v4  ;;  %v851_v8 = vrot.slane %v850_v32, 2  ;;  %v437_v0 = vsub.f32 %v375_v16, %v1768_v42  ;;  %v438_v19 = vsub.f32 %v375_v16, %v1771_v43  ;;  %v439_v46 = vsub.f32 %v375_v16, %v1774_v44 }
 0x125   : > { %2555 = vst [vmem:[#allocation45_spill] sm:$0xff] %v2180_v62  ;;  %v440_v31 = vsub.f32 %v375_v16, %v1777_v45  ;;  %v2186_v39 = vmin.f32 %v838_v28, %v839_v52  ;;  %v2188_v56 = vmin.f32 %v844_v50, %v845_v55  ;;  %v857_v35 = vrot.slane %v856_v14, 2 }
 0x126   : > { %v1070_v34 = vmin.f32 %v1069_v33, %v2094_v20  ;;  %v501_v51 = vmul.f32 %v437_v0, %v437_v0  ;;  %v502_v59 = vmul.f32 %v438_v19, %v438_v19  ;;  %v503_v61 = vmul.f32 %v439_v46, %v439_v46  ;;  %v387_v20 = vpop.permute.xlu1 %386 }
 0x127   : > { %v504_v29 = vmul.f32 %v440_v31, %v440_v31  ;;  %v2191_v26 = vmin.f32 %v850_v32, %v851_v8  ;;  %v1085_v60 = vmin.f32 %v2164_v17, %v2096_v41  ;;  %v1100_v30 = vmin.f32 %v2166_v9, %v2098_v18 }
 0x128   : > { %v1115_v53 = vmin.f32 %v2178_v6, %v2100_v27  ;;  %v813_v28 = vrot.slane %v501_v51, 4  ;;  %v819_v50 = vrot.slane %v502_v59, 4  ;;  %v825_v16 = vrot.slane %v503_v61, 4 }
 0x129   : > { %v831_v52 = vrot.slane %v504_v29, 4  ;;  %v2201_v32 = vmin.f32 %v856_v14, %v857_v35  ;;  %v2203_v8 = vmin.f32 %v1070_v34, %v501_v51  ;;  %v449_v9 = vsub.f32 %v387_v20, %v1768_v42 }
 0x12a   : > { %v814_v41 = vmin.f32 %v501_v51, %v813_v28  ;;  %v820_v17 = vmin.f32 %v502_v59, %v819_v50  ;;  %v826_v0 = vmin.f32 %v503_v61, %v825_v16  ;;  %v450_v27 = vsub.f32 %v387_v20, %v1771_v43 }
 0x12b   : > { %v832_v18 = vmin.f32 %v504_v29, %v831_v52  ;;  %v451_v6 = vsub.f32 %v387_v20, %v1774_v44  ;;  %v452_v19 = vsub.f32 %v387_v20, %v1777_v45  ;;  %v2209_v14 = vmul.f32 %v449_v9, %v449_v9 }
 0x12c   : > { %v815_v46 = vrot.slane %v814_v41, 2  ;;  %v821_v31 = vrot.slane %v820_v17, 2  ;;  %v827_v33 = vrot.slane %v826_v0, 2  ;;  %v2211_v35 = vmul.f32 %v450_v27, %v450_v27 }
 0x12d   : > { %v833_v55 = vrot.slane %v832_v18, 2  ;;  %v2213_v34 = vmul.f32 %v451_v6, %v451_v6  ;;  %v2215_v51 = vmul.f32 %v452_v19, %v452_v19  ;;  %v885_v3 = vrot.slane %v2209_v14, 4 }
 0x12e   : > { %v816_v28 = vmin.f32 %v814_v41, %v815_v46  ;;  %v822_v50 = vmin.f32 %v820_v17, %v821_v31  ;;  %v828_v16 = vmin.f32 %v826_v0, %v827_v33  ;;  %v891_v20 = vrot.slane %v2211_v35, 4  ;;  %v383_v46 = vpop.permute.xlu0 %382 }
 0x12f   : > { %v834_v52 = vmin.f32 %v832_v18, %v833_v55  ;;  %v897_v62 = vrot.slane %v2213_v34, 4  ;;  %v903_v47 = vrot.slane %v2215_v51, 4  ;;  %v1086_v6 = vmin.f32 %v1085_v60, %v502_v59 }
 0x130   : > { %v817_v9 = vrot.slane %v816_v28, 1  ;;  %v823_v4 = vrot.slane %v822_v50, 1  ;;  %v829_v27 = vrot.slane %v828_v16, 1  ;;  %v2222_v19 = vmin.f32 %v2209_v14, %v885_v3 }
 0x131   : > { %v835_v54 = vrot.slane %v834_v52, 1  ;;  %v2225_v41 = vmin.f32 %v2211_v35, %v891_v20  ;;  %v2228_v33 = vmin.f32 %v2213_v34, %v897_v62  ;;  %v853_v55 = vrot.slane %v2191_v26, 1 }
 0x132   : > { %v1101_v0 = vmin.f32 %v1100_v30, %v503_v61  ;;  %v1116_v18 = vmin.f32 %v1115_v53, %v504_v29  ;;  %v2232_v31 = vmin.f32 %v816_v28, %v817_v9  ;;  %v2234_v12 = vmin.f32 %v822_v50, %v823_v4 }
 0x133   : > { %v2236_v59 = vmin.f32 %v828_v16, %v829_v27  ;;  %v2239_v3 = vmin.f32 %v2215_v51, %v903_v47  ;;  %v2241_v60 = vmin.f32 %v834_v52, %v835_v54  ;;  %v887_v62 = vrot.slane %v2222_v19, 2 }
 0x134   : > { %v893_v20 = vrot.slane %v2225_v41, 2  ;;  %v899_v17 = vrot.slane %v2228_v33, 2  ;;  %v1072_v61 = vmin.f32 %v2203_v8, %v2150_v13  ;;  %v1087_v29 = vmin.f32 %v1086_v6, %v2152_v25 }
 0x135   : > { %v445_v4 = vsub.f32 %v383_v46, %v1768_v42  ;;  %v446_v30 = vsub.f32 %v383_v46, %v1771_v43  ;;  %v1102_v47 = vmin.f32 %v1101_v0, %v2154_v21  ;;  %v1117_v54 = vmin.f32 %v1116_v18, %v2156_v58 }
 0x136   : > { %v447_v53 = vsub.f32 %v383_v46, %v1774_v44  ;;  %v448_v28 = vsub.f32 %v383_v46, %v1777_v45  ;;  %v2556_v13 = vrot.slane %v1966_v10, 1  ;;  %v2557_v43 = vrot.slane %v1968_v63, 1 }
 0x137   : > { %v509_v16 = vmul.f32 %v445_v4, %v445_v4  ;;  %v510_v52 = vmul.f32 %v446_v30, %v446_v30  ;;  %v2558_v44 = vrot.slane %v1970_v57, 1 }
 0x138   : > { %v2259_v25 = vmin.f32 %v1966_v10, %v2556_v13  ;;  %v511_v42 = vmul.f32 %v447_v53, %v447_v53  ;;  %v512_v8 = vmul.f32 %v448_v28, %v448_v28  ;;  %v2264_v21 = vmin.f32 %v1968_v63, %v2557_v43 }
 0x139   : > { %v2269_v45 = vmin.f32 %v1970_v57, %v2558_v44  ;;  %v861_v58 = vrot.slane %v509_v16, 4  ;;  %v867_v9 = vrot.slane %v510_v52, 4  ;;  %v1073_v27 = vmin.f32 %v1072_v61, %v509_v16 }
 0x13a   : > { %v1088_v6 = vmin.f32 %v1087_v29, %v510_v52  ;;  %v873_v0 = vrot.slane %v511_v42, 4  ;;  %v879_v18 = vrot.slane %v512_v8, 4  ;;  %v1103_v10 = vmin.f32 %v1102_v47, %v511_v42 }
 0x13b   : > { %v1118_v46 = vmin.f32 %v1117_v54, %v512_v8  ;;  %v862_v4 = vmin.f32 %v509_v16, %v861_v58  ;;  %v868_v30 = vmin.f32 %v510_v52, %v867_v9  ;;  %v1074_v53 = vmin.f32 %v1073_v27, %v2209_v14  ;;  %v2559_v52 = vld [vmem:[#allocation8_spill] sm:$0xff] }
 0x13c   : > { %v1089_v63 = vmin.f32 %v1088_v6, %v2211_v35  ;;  %v874_v28 = vmin.f32 %v511_v42, %v873_v0  ;;  %v880_v13 = vmin.f32 %v512_v8, %v879_v18  ;;  %v1104_v43 = vmin.f32 %v1103_v10, %v2213_v34 }
 0x13d   : > { %v1119_v57 = vmin.f32 %v1118_v46, %v2215_v51  ;;  %v863_v44 = vrot.slane %v862_v4, 2  ;;  %v869_v50 = vrot.slane %v868_v30, 2  ;;  %v1121_v61 = vmul.f32 %v1737_v22, %v1074_v53 }
 0x13e   : > { %v1122_v29 = vmul.f32 %v1741_v23, %v1089_v63  ;;  %v875_v47 = vrot.slane %v874_v28, 2  ;;  %v881_v54 = vrot.slane %v880_v13, 2  ;;  %v1123_v16 = vmul.f32 %v1745_v24, %v1104_v43 }
 0x13f   : > { %v1124_v14 = vmul.f32 %v2559_v52, %v1119_v57  ;;  %v1125_v58 = vrot.slane %v1121_v61, 4  ;;  %v2560_v42 = vrot.slane %v1973_v15, 1  ;;  %v673_v51 = vrot.slane %v2062_v48, 1 }
 0x140   : > { %v1131_v35 = vrot.slane %v1122_v29, 4  ;;  %v2285_v8 = vmin.f32 %v862_v4, %v863_v44  ;;  %v1137_v22 = vrot.slane %v1123_v16, 4  ;;  %v679_v23 = vrot.slane %v2064_v37, 1 }
 0x141   : > { %v2282_v34 = vmin.f32 %v1973_v15, %v2560_v42  ;;  %v1143_v9 = vrot.slane %v1124_v14, 4  ;;  %v2288_v27 = vmin.f32 %v868_v30, %v869_v50  ;;  %v2290_v24 = vmin.f32 %v874_v28, %v875_v47 }
 0x142   : > { %v1126_v6 = vadd.f32 %v1125_v58, %v1121_v61  ;;  %v1132_v0 = vadd.f32 %v1131_v35, %v1122_v29  ;;  %v2292_v18 = vmin.f32 %v880_v13, %v881_v54  ;;  %v1138_v10 = vadd.f32 %v1137_v22, %v1123_v16 }
 0x143   : > { %v1144_v46 = vadd.f32 %v1143_v9, %v1124_v14  ;;  %v685_v15 = vrot.slane %v2066_v36, 1  ;;  %v2561_v4 = vrot.slane %v2020_v11, 2  ;;  %v2562_v57 = vrot.slane %v2023_v1, 2 }
 0x144   : > { %v1127_v53 = vrot.slane %v1126_v6, 2  ;;  %v1133_v63 = vrot.slane %v1132_v0, 2  ;;  %v1139_v30 = vrot.slane %v1138_v10, 2  ;;  %v674_v44 = vmin.f32 %v2062_v48, %v673_v51 }
 0x145   : > { %v696_v43 = vmin.f32 %v2020_v11, %v2561_v4  ;;  %v702_v50 = vmin.f32 %v2023_v1, %v2562_v57  ;;  %v1145_v28 = vrot.slane %v1144_v46, 2  ;;  %v691_v13 = vrot.slane %v2074_v5, 1  ;;  %v2566_v4 = vld [vmem:[#allocation20_spill] sm:$0xff]  ;;  %v2567_v57 = vld [vmem:[#allocation17_spill] sm:$0xff] }
 0x146   : > { %v1128_v61 = vadd.f32 %v1127_v53, %v1126_v6  ;;  %v1134_v29 = vadd.f32 %v1133_v63, %v1132_v0  ;;  %v1140_v16 = vadd.f32 %v1139_v30, %v1138_v10  ;;  %v2563_v14 = vrot.slane %v2026_v40, 2 }
 0x147   : > { %v697_v47 = vrot.slane %v696_v43, 1  ;;  %v703_v54 = vrot.slane %v702_v50, 1  ;;  %v2303_v52 = vadd.f32 %v1145_v28, %v1144_v46  ;;  %v2564_v58 = vrot.slane %v2029_v2, 2  ;;  %v2569_v28 = vld [vmem:[#allocation18_spill] sm:$0xff] }
 0x148   : > { %v708_v11 = vmin.f32 %v2026_v40, %v2563_v14  ;;  %v1129_v35 = vrot.slane %v1128_v61, 1  ;;  %v1135_v42 = vrot.slane %v1134_v29, 1  ;;  %v680_v48 = vmin.f32 %v2064_v37, %v679_v23  ;;  %v2565_v23 = vld [vmem:[#allocation13_spill] sm:$0xff]  ;;  %v2574_v14 = vld [vmem:[#allocation19_spill] sm:$0xff] }
 0x149   : > { %v714_v1 = vmin.f32 %v2029_v2, %v2564_v58  ;;  %v686_v51 = vmin.f32 %v2066_v36, %v685_v15  ;;  %v1141_v22 = vrot.slane %v1140_v16, 1  ;;  %v692_v9 = vmin.f32 %v2074_v5, %v691_v13  ;;  %v2570_v13 = vld [vmem:[#allocation25_spill] sm:$0xff] }
 0x14a   : > { %v709_v6 = vrot.slane %v708_v11, 1  ;;  %v698_v10 = vmin.f32 %v696_v43, %v697_v47  ;;  %v704_v46 = vmin.f32 %v702_v50, %v703_v54  ;;  %v2314_v40 = vadd.f32 %v1129_v35, %v1128_v61  ;;  %v2568_v50 = vld [vmem:[#allocation24_spill] sm:$0xff]  ;;  %v2573_v54 = vld [vmem:[#allocation15_spill] sm:$0xff]  ;;  %v2576_v35 = vld [vmem:[#allocation21_spill] sm:$0xff] }
 0x14b   : > { %v715_v0 = vrot.slane %v714_v1, 1  ;;  %v2316_v53 = vadd.f32 %v1135_v42, %v1134_v29  ;;  %v2318_v2 = vadd.f32 %v1141_v22, %v1140_v16  ;;  %v1147_v63 = vrot.slane %v2303_v52, 1  ;;  %v2572_v29 = vld [vmem:[#allocation14_spill] sm:$0xff] }
 0x14c   : > { %v710_v37 = vmin.f32 %v708_v11, %v709_v6  ;;  %v974_v36 = vsel %vm973_vm4, %v1929_v7, %v1900_v38  ;;  %v987_v30 = vsel %vm973_vm4, %v2568_v50, %v2567_v57  ;;  %v994_v38 = vsel %vm973_vm4, %v2570_v13, %v2569_v28  ;;  %v2571_v7 = vld [vmem:[#allocation27_spill] sm:$0xff]  ;;  %v2575_v11 = vld [vmem:[#allocation26_spill] sm:$0xff] }
 0x14d   : > { %v716_v5 = vmin.f32 %v714_v1, %v715_v0  ;;  %v976_v15 = vsel %vm975_vm5, %v2565_v23, %v974_v36  ;;  %v988_v47 = vsel %vm975_vm5, %v2572_v29, %v987_v30  ;;  %v995_v16 = vsel %vm975_vm5, %v2573_v54, %v994_v38  ;;  %v2577_v22 = vld [vmem:[#allocation22_spill] sm:$0xff]  ;;  %v2578_v0 = vld [vmem:[#allocation16_spill] sm:$0xff]  ;;  %v2581_v50 = vld [vmem:[#allocation23_spill] sm:$0xff] }
 0x14e   : > { %v978_v43 = vsel %vm977_vm6, %v2566_v4, %v976_v15  ;;  %v1001_v58 = vsel %vm973_vm4, %v2575_v11, %v2574_v14  ;;  %v989_v42 = vsel %vm977_vm6, %v2576_v35, %v988_v47  ;;  %v996_v6 = vsel %vm977_vm6, %v2577_v22, %v995_v16  ;;  %v2579_v15 = vld [vmem:[#allocation28_spill] sm:$0xff]  ;;  %v2582_v38 = vld [vmem:[#allocation30_spill] sm:$0xff] }
 0x14f   : > { %v980_v61 = vsel %vm979_vm7, %v2571_v7, %v978_v43  ;;  %v1002_v36 = vsel %vm975_vm5, %v2578_v0, %v1001_v58  ;;  %v990_v4 = vsel %vm979_vm7, %v2579_v15, %v989_v42  ;;  %v2580_v43 = vld [vmem:[#allocation29_spill] sm:$0xff]  ;;  %v2583_v16 = vrot.slane %v2186_v39, 1 }
 0x150   : > { %v982_v1 = vsel %vm981_vm8, %v2259_v25, %v980_v61  ;;  %v997_v57 = vsel %vm979_vm7, %v2580_v43, %v996_v6  ;;  %v1003_v25 = vsel %vm977_vm6, %v2581_v50, %v1002_v36  ;;  %v991_v28 = vsel %vm981_vm8, %v2264_v21, %v990_v4  ;;  %v2587_v43 = vld [vmem:[#allocation35_spill] sm:$0xff]  ;;  %v2592_v50 = vld [vmem:[#allocation33_spill] sm:$0xff] }
 0x151   : > { %v984_v23 = vsel %vm983_vm9, %v674_v44, %v982_v1  ;;  %v998_v13 = vsel %vm981_vm8, %v2269_v45, %v997_v57  ;;  %v1004_v44 = vsel %vm979_vm7, %v2582_v38, %v1003_v25  ;;  %v992_v7 = vsel %vm983_vm9, %v680_v48, %v991_v28  ;;  %v2591_v57 = vld [vmem:[#allocation37_spill] sm:$0xff] }
 0x152   : > { %v986_v30 = vsel %vm985_vm10, %v698_v10, %v984_v23  ;;  %v999_v61 = vsel %vm983_vm9, %v686_v51, %v998_v13  ;;  %v1005_v29 = vsel %vm981_vm8, %v2282_v34, %v1004_v44  ;;  %v993_v54 = vsel %vm985_vm10, %v704_v46, %v992_v7  ;;  %v2593_v13 = vld [vmem:[#allocation39_spill] sm:$0xff] }
 0x153   : > { %v1044_v47 = vmin.f32 %v986_v30, 3e+38  ;;  %v1000_v10 = vsel %vm985_vm10, %v710_v37, %v999_v61  ;;  %v1006_v21 = vsel %vm983_vm9, %v692_v9, %v1005_v29  ;;  %v842_v45 = vmin.f32 %v2186_v39, %v2583_v16  ;;  %v2594_v44 = vld [vmem:[#allocation43_spill] sm:$0xff]  ;;  %v2595_v61 = vld [vmem:[#allocation44_spill] sm:$0xff]  ;;  %v2597_v16 = vld [vmem:[#allocation41_spill] sm:$0xff] }
 0x154   : > { %v1007_v14 = vsel %vm985_vm10, %v716_v5, %v1006_v21  ;;  %v1045_v11 = vmin.f32 %v993_v54, 3e+38  ;;  %v1046_v48 = vmin.f32 %v1000_v10, 3e+38  ;;  %v2584_v51 = vrot.slane %v2188_v56, 1  ;;  %v2596_v10 = vld [vmem:[#allocation40_spill] sm:$0xff] }
 0x155   : > { %v1047_v34 = vmin.f32 %v1007_v14, 3e+38  ;;  %v854_v46 = vmin.f32 %v2191_v26, %v853_v55  ;;  %v2585_v37 = vrot.slane %v2201_v32, 1  ;;  %v865_v1 = vrot.slane %v2285_v8, 1 }
 0x156   : > { %v848_v58 = vmin.f32 %v2188_v56, %v2584_v51  ;;  %v1251_v39 = vmin.f32 %v1044_v47, %v1046_v48  ;;  %v871_v5 = vrot.slane %v2288_v27, 1  ;;  %v877_v35 = vrot.slane %v2290_v24, 1  ;;  %v2598_v51 = vld [vmem:[#allocation38_spill] sm:$0xff] }
 0x157   : > { %v860_v9 = vmin.f32 %v2201_v32, %v2585_v37  ;;  %v883_v42 = vrot.slane %v2292_v18, 1  ;;  %v1252_v22 = vmin.f32 %v1045_v11, %v1047_v34  ;;  %v866_v56 = vmin.f32 %v2285_v8, %v865_v1  ;;  %v2599_v34 = vld [vmem:[#allocation34_spill] sm:$0xff] }
 0x158   : > { %v888_v26 = vmin.f32 %v2222_v19, %v887_v62  ;;  %v894_v32 = vmin.f32 %v2225_v41, %v893_v20  ;;  %v872_v55 = vmin.f32 %v2288_v27, %v871_v5  ;;  %v878_v6 = vmin.f32 %v2290_v24, %v877_v35  ;;  %v2588_v41 = vld [vmem:[#allocation31_spill] sm:$0xff]  ;;  %v2589_v27 = vld [vmem:[#allocation36_spill] sm:$0xff]  ;;  %v2600_v5 = vld [vmem:[#allocation45_spill] sm:$0xff] }
 0x159   : > { %v884_v0 = vmin.f32 %v2292_v18, %v883_v42  ;;  %v900_v36 = vmin.f32 %v2228_v33, %v899_v17  ;;  %v1253_v23 = vmin.f32 %v1251_v39, %v1252_v22  ;;  %v2586_v4 = vrot.slane %v2239_v3, 2  ;;  %v2590_v24 = vld [vmem:[#allocation32_spill] sm:$0xff] }
 0x15a   : > { %v889_v8 = vrot.slane %v888_v26, 1  ;;  %v895_v15 = vrot.slane %v894_v32, 1  ;;  %v1008_v20 = vsel %vm973_vm4, %v2588_v41, %v2587_v43  ;;  %v1015_v18 = vsel %vm973_vm4, %v2590_v24, %v2589_v27  ;;  %v2605_v43 = vld [vmem:[#allocation9_spill] sm:$0xff]  ;;  %v2608_v27 = vld [vmem:[#allocation11_spill] sm:$0xff] }
 0x15b   : > { %v906_v19 = vmin.f32 %v2239_v3, %v2586_v4  ;;  %v901_v62 = vrot.slane %v900_v36, 1  ;;  %v1022_v33 = vsel %vm973_vm4, %v2592_v50, %v2591_v57  ;;  %1254 = vmin.xlane.f32.xlu0 %v1253_v23  ;;  %v1009_v3 = vsel %vm975_vm5, %v2172_v49, %v1008_v20 }
 0x15c   : > { %v890_v17 = vmin.f32 %v888_v26, %v889_v8  ;;  %v896_v25 = vmin.f32 %v894_v32, %v895_v15  ;;  %v1010_v38 = vsel %vm977_vm6, %v2593_v13, %v1009_v3  ;;  %v1016_v7 = vsel %vm975_vm5, %v2594_v44, %v1015_v18 }
 0x15d   : > { %v907_v30 = vrot.slane %v906_v19, 1  ;;  %v902_v28 = vmin.f32 %v900_v36, %v901_v62  ;;  %v1023_v29 = vsel %vm975_vm5, %v2595_v61, %v1022_v33  ;;  %v1011_v54 = vsel %vm979_vm7, %v2232_v31, %v1010_v38  ;;  %v2604_v62 = vld [vmem:[#allocation10_spill] sm:$0xff] }
 0x15e   : > { %v1017_v21 = vsel %vm977_vm6, %v2596_v10, %v1016_v7  ;;  %v1024_v49 = vsel %vm977_vm6, %v2597_v16, %v1023_v29  ;;  %v1012_v14 = vsel %vm981_vm8, %v842_v45, %v1011_v54  ;;  %v1029_v37 = vsel %vm973_vm4, %v2599_v34, %v2598_v51 }
 0x15f   : > { %v908_v47 = vmin.f32 %v906_v19, %v907_v30  ;;  %v1018_v11 = vsel %vm979_vm7, %v2234_v12, %v1017_v21  ;;  %v1025_v48 = vsel %vm979_vm7, %v2236_v59, %v1024_v49  ;;  %v1013_v31 = vsel %vm983_vm9, %v866_v56, %v1012_v14  ;;  %v2601_v59 = vld [vmem:[#allocation42_spill] sm:$0xff] }
 0x160   : > { %v1019_v1 = vsel %vm981_vm8, %v848_v58, %v1018_v11  ;;  %v1026_v39 = vsel %vm981_vm8, %v854_v46, %v1025_v48  ;;  %v1030_v35 = vsel %vm975_vm5, %v2600_v5, %v1029_v37  ;;  %v1014_v45 = vsel %vm985_vm10, %v890_v17, %v1013_v31 }
 0x161   : > { %v1020_v12 = vsel %vm983_vm9, %v872_v55, %v1019_v1  ;;  %v1027_v42 = vsel %vm983_vm9, %v878_v6, %v1026_v39  ;;  %v1031_v22 = vsel %vm977_vm6, %v2601_v59, %v1030_v35  ;;  %v1048_v46 = vmin.f32 %v1014_v45, 3e+38 }
 0x162   : > { %v1021_v26 = vsel %vm985_vm10, %v896_v25, %v1020_v12  ;;  %v1028_v56 = vsel %vm985_vm10, %v902_v28, %v1027_v42  ;;  %v1032_v58 = vsel %vm979_vm7, %v2241_v60, %v1031_v22  ;;  %v1148_v32 = vadd.f32 %v1147_v63, %v2303_v52 }
 0x163   : > { %v1033_v36 = vsel %vm981_vm8, %v860_v9, %v1032_v58  ;;  %v1050_v55 = vmin.f32 %v1028_v56, 3e+38  ;;  %v203_v23 = vlaneseq  ;;  %v1049_v8 = vmin.f32 %v1021_v26, 3e+38 }
 0x164   : > { %v1034_v6 = vsel %vm983_vm9, %v884_v0, %v1033_v36  ;;  %v1603_v19 = vmov 1966171168   ;;  %v1213_v41 = vcombine.low %v2605_v43, %v2604_v62  ;;  %v2606_v63 = vmov 0.0   ;;  %v2607_v0 = vld [vmem:[#allocation12_spill] sm:$0xff] }
 0x165   : > { %v1035_v15 = vsel %vm985_vm10, %v908_v47, %v1034_v6  ;;  %vm2456_vm11 = vcmp.lt.s32.totalorder %v203_v23, 512  ;;  %v1156_v60 = vunpack.c.l.s4 %v1603_v19  ;;  %v1256_v52 = vmin.f32 %v1048_v46, %v1050_v55 }
 0x166   : > { %v1051_v20 = vmin.f32 %v1035_v15, 3e+38  ;;  %208 = vst.msk [vmem:[#allocation4] sm:$0xf] %vm2456_vm11, %v2606_v63  ;;  %v1159_v9 = vshrl.u32 %v203_v23, 7  ;;  %v1214_v24 = vcombine.low %v2608_v27, %v2607_v0  ;;  %v1153_v18 = vcombine.low %v2314_v40, %v2316_v53 }
 0x167   : > { %207 = vst.msk [vmem:[#allocation3] sm:$0xf] %vm2456_vm11, %v2606_v63  ;;  %v1154_v57 = vcombine.low %v2318_v2, %v1148_v32  ;;  %v1157_v50 = vunpack.c.0.s8 %v1156_v60 }
 0x168   : > { %v1257_v33 = vmin.f32 %v1049_v8, %v1051_v20  ;;  %v1274_v40 = vsub.s32 0, %v1159_v9  ;;  %v1278_v53 = vsub.s32 1, %v1159_v9  ;;  %v1282_v2 = vsub.s32 2, %v1159_v9 }
 0x169   : > { %v1160_v17 = vsub.s32 %v1157_v50, %v1159_v9  ;;  %v1286_v21 = vsub.s32 3, %v1159_v9 }
 0x16a   : > { %v1258_v25 = vmin.f32 %v1256_v52, %v1257_v33 }
 0x16b   : > { %v1161_v30 = vrot.slane %v1153_v18, %v1160_v17  ;;  %v1168_v3 = vrot.slane %v1154_v57, %v1160_v17  ;;  %v1221_v28 = vrot.slane %v1213_v41, %v1160_v17  ;;  %v1228_v13 = vrot.slane %v1214_v24, %v1160_v17 }
 0x16c   : > { %1259 = vmin.xlane.f32.xlu1 %v1258_v25 }
 0x16d   : > { %v1169_v38 = vcombine.low %v1161_v30, %v1168_v3  ;;  %v1229_v44 = vcombine.low %v1221_v28, %v1228_v13  ;;  %v1184_v7 = vld [vmem:[#allocation4] sm:$0xf] }
 0x16e   : > { %v1120_v61 = vld [vmem:[#allocation3] sm:$0xf] }
 0x16f   : > { %v1176_v29 = vrot.slane %v1169_v38, %v1160_v17  ;;  %v1236_v47 = vrot.slane %v1229_v44, %v1160_v17 }
 0x171   : > { %v1238_v54 = vadd.f32 %v1236_v47, %v1184_v7  ;;  %v1178_v10 = vadd.f32 %v1176_v29, %v1120_v61 }
 0x173   : > { %1239 = vst.msk [vmem:[#allocation4] sm:$0xf] %vm2456_vm11, %v1238_v54  ;;  %1183 = vst.msk [vmem:[#allocation3] sm:$0xf] %vm2456_vm11, %v1178_v10 }
 0x17a   : > { %v1302_v16 = vld [vmem:[#allocation4] sm:$0xf]  ;;  %v1270_v49 = vld [vmem:[#allocation3] sm:$0xf] }
 0x17b   : > { %v1307_v14 = vrot.slane %v1302_v16, %v1274_v40  ;;  %v1311_v11 = vrot.slane %v1302_v16, %v1278_v53  ;;  %v1315_v48 = vrot.slane %v1302_v16, %v1282_v2  ;;  %v1319_v51 = vrot.slane %v1302_v16, %v1286_v21 }
 0x17c   : > { %v1275_v34 = vrot.slane %v1270_v49, %v1274_v40  ;;  %v1279_v37 = vrot.slane %v1270_v49, %v1278_v53  ;;  %v1283_v31 = vrot.slane %v1270_v49, %v1282_v2  ;;  %v1287_v59 = vrot.slane %v1270_v49, %v1286_v21 }
 0x17d   : > { %v1324_v1 = vsel %vm1292_vm12, %v1307_v14, 0.0  ;;  %v1325_v39 = vsel %vm1292_vm12, %v1311_v11, 0.0  ;;  %v1327_v5 = vsel %vm1292_vm12, %v1315_v48, 0.0  ;;  %v1329_v42 = vsel %vm1292_vm12, %v1319_v51, 0.0 }
 0x17e   : > { %v1326_v35 = vadd.f32 %v1325_v39, %v1324_v1  ;;  %v1293_v45 = vsel %vm1292_vm12, %v1275_v34, 0.0  ;;  %v1294_v12 = vsel %vm1292_vm12, %v1279_v37, 0.0  ;;  %v1296_v56 = vsel %vm1292_vm12, %v1283_v31, 0.0 }
 0x17f   : > { %v1295_v22 = vadd.f32 %v1294_v12, %v1293_v45  ;;  %v1298_v32 = vsel %vm1292_vm12, %v1287_v59, 0.0 }
 0x180   : > { %v1328_v26 = vadd.f32 %v1327_v5, %v1326_v35 }
 0x181   : > { %v1297_v58 = vadd.f32 %v1296_v56, %v1295_v22 }
 0x182   : > { %v1330_v46 = vadd.f32 %v1329_v42, %v1328_v26 }
 0x183   : > { %v1299_v36 = vadd.f32 %v1298_v32, %v1297_v58 }
 0x184   : > { %1331 = vadd.xlane.f32.xlu0 %v1330_v46 }
 0x188   : > { %1300 = vadd.xlane.f32.xlu0 %v1299_v36 }
 0x1e8   : > { %v1255_v23 = vpop.xlane.xlu0 %1254 }
 0x1f9   : > { %v1260_v55 = vpop.xlane.xlu1 %1259 }
 0x1fa   : > { %v1261_v6 = vadd.f32 %v1260_v55, %v1255_v23 }
 0x1fc   : > { %v1262_v8 = vrot.slane %v1261_v6, 4 }
 0x1fe   : > { %v1263_v15 = vadd.f32 %v1262_v8, %v1261_v6 }
 0x200   : > { %v1264_v4 = vrot.slane %v1263_v15, 2 }
 0x202   : > { %v1265_v62 = vadd.f32 %v1264_v4, %v1263_v15 }
 0x204   : > { %v1266_v43 = vrot.slane %v1265_v62, 1 }
 0x206   : > { %v1267_v41 = vadd.f32 %v1266_v43, %v1265_v62 }
 0x208   : > { %v1269_v9 = vmul.f32 0.0625, %v1267_v41 }
 0x211   : > { %v1332_v19 = vpop.xlane.xlu0 %1331 }
 0x212   : > { %v1334_v60 = vmax.f32 %v1332_v19, 1.0  ;;  %vm1333_vm13 = vcmp.gt.f32.partialorder %v1332_v19, 0.0 }
 0x214   : > { %1516 = vrcp.f32 %v1334_v60 }
 0x215   : > { %v1301_v20 = vpop.xlane.xlu0 %1300 }
 0x21e   : > { %v1517_v52 = vpop.eup %1516 }
 0x21f   : > { %v1336_v63 = vmul.f32 %v1517_v52, %v1301_v20 }
 0x221   : > { %v1337_v0 = vsel %vm1333_vm13, %v1336_v63, 0.0 }
 0x222   : > { %v1338_v27 = vadd.f32 %v1337_v0, %v1269_v9 }
 0x224   : > { %1340 = vst.msk [vmem:[%s190_s3] sm:$0x1] %vm1339_vm14, %v1338_v27 }
 0x225 PF: > { %s15_s14 = sadd.s32 1, %s1598_s14   ;;  %s2609_s9 = smov %s1582_s10 }
 0x226   : > { %p12_p7 = scmp.ge.s32.totalorder %s15_s14, 4   ;;  %s2610_s10 = smov %s1586_s11 }
 0x227   : > { %s2611_s11 = smov %s1668_s21  ;;  %s2612_s12 = smov %s1594_s13 }
 0x228   : > { %s2613_s13 = smov %s2615_s16  ;;  %14 = sbr.rel (!%p12_p7) target bundleno = 4 (0x4), region = 79 }
 0x22f   :  { %1358 = vsyncpa [#allocation6], 1 }
 0x230   :  { %1360 = vsyncpa [#allocation6 + $0x1], 1 }

</bundles_post_ra>
